<compile_context>
chip_gen: v5e
topology: v5e:2x2
jax: 0.10.0
libtpu: 0.0.40
codegen_flags: <defaults>
</compile_context>

<pallas_src>
import functools

import jax
import jax.numpy as jnp
import numpy as np
from jax.experimental import pallas as pl
from jax.experimental.pallas import tpu as pltpu


# -----------------------------------------------------------------------------
# Parameter-slab layout (shared by the host packer and the kernel factory)
# -----------------------------------------------------------------------------
def _slab_layout(c, hid, o, num_layers):
    """Row offsets of every weight piece inside the single [R, 3*hid] param slab."""
    wmax = 3 * hid
    per_layer = [
        # name       rows     cols
        ("w1h",      c,       3 * hid),  # hstack(w1_pre, w1_suc, w1_dis)
        ("w2blk",    3 * hid, 3 * hid),  # block_diag(w2_pre, w2_suc, w2_dis)
        ("w3blk",    3 * hid, 3 * o),    # block_diag(w3_pre, w3_suc, w3_dis)
        ("wm1br",    3 * o,   hid),      # merge-1 rows for the 3 branch pieces
        ("wm1pool",  o,       hid),      # merge-1 rows for the pooled piece
        ("wm1h",     o,       hid),      # merge-1 rows for the h piece
        ("wm1raw",   c,       hid),      # merge-1 rows for the raw piece
        ("wm2",      hid,     hid),
        ("wm3",      hid,     o),
        ("bias",     8,       wmax),     # rows: b1 | b2 | b3 | bm1 | bm2 | bm3 | 0 | 0
    ]
    offsets = {}
    r = 0
    for l in range(num_layers):
        for name, nr, nc in per_layer:
            assert nr % 8 == 0, (name, nr)          # keep every piece sublane-aligned
            assert nc <= wmax, (name, nc, wmax)
            offsets[(l, name)] = (r, nr, nc)
            r += nr
    return offsets, r, wmax


def _block_diag3(ws):
    """ws: list of 3 equally-shaped [i, o] matrices -> [3i, 3o] block-diagonal."""
    i, o = ws[0].shape
    out = np.zeros((3 * i, 3 * o), np.float32)
    for k, w in enumerate(ws):
        out[k * i:(k + 1) * i, k * o:(k + 1) * o] = np.asarray(w, np.float32)
    return out


def pack_rlgnn_params(layer_params):
    """Pack all per-layer weights/biases into ONE contiguous f32 slab [R, 3*hid]."""
    p0 = layer_params[0]
    c, hid = p0["w1"].shape[1], p0["w1"].shape[2]
    o = p0["w3"].shape[2]
    num_layers = len(layer_params)
    # The original module's merge concat (6*out_chnl wide) only type-checks when
    # in_chnl == out_chnl (true for the module defaults) — load-bearing for packing.
    assert c == o, "RLGNN merge concat requires in_chnl == out_chnl"
    assert c % 8 == 0 and hid % 8 == 0 and o % 8 == 0
    assert hid >= o

    offsets, total_rows, wmax = _slab_layout(c, hid, o, num_layers)
    slab = np.zeros((total_rows, wmax), np.float32)

    def put(l, name, arr):
        r0, nr, nc = offsets[(l, name)]
        arr = np.asarray(arr, np.float32)
        assert arr.shape == (nr, nc), (name, arr.shape, (nr, nc))
        slab[r0:r0 + nr, :nc] = arr

    for l, p in enumerate(layer_params):
        w1, b1 = np.asarray(p["w1"]), np.asarray(p["b1"])
        w2, b2 = np.asarray(p["w2"]), np.asarray(p["b2"])
        w3, b3 = np.asarray(p["w3"]), np.asarray(p["b3"])
        wm1, bm1 = np.asarray(p["wm1"]), np.asarray(p["bm1"])
        wm2, bm2 = np.asarray(p["wm2"]), np.asarray(p["bm2"])
        wm3, bm3 = np.asarray(p["wm3"]), np.asarray(p["bm3"])

        put(l, "w1h", np.concatenate([w1[0], w1[1], w1[2]], axis=1))      # [c, 3h]
        put(l, "w2blk", _block_diag3([w2[0], w2[1], w2[2]]))              # [3h, 3h]
        put(l, "w3blk", _block_diag3([w3[0], w3[1], w3[2]]))              # [3h, 3o]
        # merge-1 weight rows, in the original concat order [pre,suc,dis,pooled,h,raw]
        put(l, "wm1br", wm1[0:3 * o, :])
        put(l, "wm1pool", wm1[3 * o:4 * o, :])
        put(l, "wm1h", wm1[4 * o:5 * o, :])
        put(l, "wm1raw", wm1[5 * o:6 * o, :])
        put(l, "wm2", wm2)
        put(l, "wm3", wm3)

        bias = np.zeros((8, wmax), np.float32)
        bias[0, :3 * hid] = b1.reshape(-1)   # [b1_pre | b1_suc | b1_dis]
        bias[1, :3 * hid] = b2.reshape(-1)
        bias[2, :3 * o] = b3.reshape(-1)
        bias[3, :hid] = bm1.reshape(-1)
        bias[4, :hid] = bm2.reshape(-1)
        bias[5, :o] = bm3.reshape(-1)
        put(l, "bias", bias)

    return jnp.asarray(slab)


# -----------------------------------------------------------------------------
# Pallas kernel: full RLGNN forward (all layers fused, 3 branches collapsed)
# -----------------------------------------------------------------------------
def make_rlgnn_kernel(n, c, hid, o, num_layers, offsets):
    n3 = 3 * n

    def kernel(a_ref, xraw_ref, p_ref, out_ref):
        # a_ref   : [rows_a, n]   stacked [A_pre; A_suc; A_dis] (+ zero row padding)
        # xraw_ref: [n, 2c]       [x | raw]
        # p_ref   : [R, 3*hid]    packed parameter slab
        # out_ref : [n, o]

        def wp(l, name):
            r0, nr, nc = offsets[(l, name)]
            return p_ref[pl.ds(r0, nr), pl.ds(0, nc)]   # static view -> small VMEM load

        a_stack = a_ref[...]
        xr = xraw_ref[...]
        h = xr[:, :c]
        raw = xr[:, c:2 * c]

        # Block-diagonal selection mask for the collapsed branch outputs [3n, 3o]:
        # row block k (rows of branch k) keeps only column block k. Built once,
        # hoisted out of the layer loop (pure compares — no integer division).
        ri = jax.lax.broadcasted_iota(jnp.int32, (n3, 3 * o), 0)
        ci = jax.lax.broadcasted_iota(jnp.int32, (n3, 3 * o), 1)
        mask = jnp.zeros((n3, 3 * o), jnp.float32)
        for k in range(3):
            in_blk = ((ri >= k * n) & (ri < (k + 1) * n)
                      & (ci >= k * o) & (ci < (k + 1) * o))
            mask = jnp.where(in_blk, 1.0, mask)

        f32 = jnp.float32
        for l in range(num_layers):   # static unroll over layers, weights statically indexed
            bias = wp(l, "bias")                       # [8, 3*hid]
            b1 = bias[0:1, :3 * hid]
            b2 = bias[1:2, :3 * hid]
            b3 = bias[2:3, :3 * o]
            bm1 = bias[3:4, :hid]
            bm2 = bias[4:5, :hid]
            bm3 = bias[5:6, :o]

            # --- message passing for all 3 relations in one matmul ----------------
            agg_all = jnp.dot(a_stack, h, preferred_element_type=f32)   # [rows_a, c]
            agg3 = agg_all[:n3, :]                                       # [3n, c]

            # pooled piece: exact f32 sum over nodes (kept on the XLU on purpose)
            pooled = jnp.maximum(jnp.sum(h, axis=0, keepdims=True), 0.0)  # [1, c]

            # --- collapsed branch MLPs (hstacked W1, block-diag W2/W3) ------------
            # Off-diagonal column blocks carry cross-branch values, but block-diag
            # W2/W3 keep them out of the diagonal blocks; they are masked off below.
            t = jnp.maximum(
                jnp.dot(agg3, wp(l, "w1h"), preferred_element_type=f32) + b1, 0.0)
            t = jnp.maximum(
                jnp.dot(t, wp(l, "w2blk"), preferred_element_type=f32) + b2, 0.0)
            t = jnp.maximum(
                jnp.dot(t, wp(l, "w3blk"), preferred_element_type=f32) + b3, 0.0)
            t = t * mask                                                 # [3n, 3o]

            # --- merge MLP layer 1 (no concat: partial-sum matmuls) ---------------
            mb = jnp.dot(t, wp(l, "wm1br"), preferred_element_type=f32)  # [3n, hid]
            m = (jnp.dot(pooled, wp(l, "wm1pool"), preferred_element_type=f32)   # [1, hid]
                 + jnp.dot(h, wp(l, "wm1h"), preferred_element_type=f32)
                 + jnp.dot(raw, wp(l, "wm1raw"), preferred_element_type=f32)
                 + bm1
                 + mb[0:n, :] + mb[n:2 * n, :] + mb[2 * n:3 * n, :])
            m = jnp.maximum(m, 0.0)

            # --- merge MLP layers 2 & 3 --------------------------------------------
            m = jnp.maximum(
                jnp.dot(m, wp(l, "wm2"), preferred_element_type=f32) + bm2, 0.0)
            h = jnp.dot(m, wp(l, "wm3"), preferred_element_type=f32) + bm3

        out_ref[...] = h.astype(out_ref.dtype)

    return kernel


# -----------------------------------------------------------------------------
# Wrapper: one grid-less pallas_call, 3 input DMAs, everything VMEM-resident
# -----------------------------------------------------------------------------
def make_rlgnn_forward(n, c, hid, o, num_layers):
    offsets, total_rows, wmax = _slab_layout(c, hid, o, num_layers)
    kernel = make_rlgnn_kernel(n, c, hid, o, num_layers, offsets)
    rows_a = ((3 * n + 7) // 8) * 8
    vmem_spec = pl.BlockSpec(memory_space=pltpu.MemorySpace.VMEM)

    # Advisory cost estimate so XLA schedules the custom call sensibly.
    per_layer_flops = (
        2 * rows_a * n * c                                   # stacked aggregation
        + 2 * 3 * n * (c * 3 * hid + 3 * hid * 3 * hid + 3 * hid * 3 * o)  # branch MLPs
        + 2 * 3 * n * 3 * o * hid                            # branch merge pieces
        + 2 * (1 + 2 * n) * c * hid                          # pooled / h / raw pieces
        + 2 * n * (hid * hid + hid * o)                      # merge layers 2 & 3
    )
    bytes_accessed = 4 * (rows_a * n + n * 2 * c + total_rows * wmax + n * o)
    cost = pl.CostEstimate(flops=int(num_layers * per_layer_flops),
                           transcendentals=0,
                           bytes_accessed=int(bytes_accessed))

    call = pl.pallas_call(
        kernel,
        out_shape=jax.ShapeDtypeStruct((n, o), jnp.float32),
        in_specs=[vmem_spec, vmem_spec, vmem_spec],
        out_specs=vmem_spec,
        cost_estimate=cost,
    )

    @jax.jit
    def fwd(a, raw, x, slab):
        # Stack the three aggregation matrices (zero-pad rows to a sublane multiple).
        pieces = [a[0], a[1], a[2]]
        if rows_a > 3 * n:
            pieces.append(jnp.zeros((rows_a - 3 * n, n), jnp.float32))
        a_stack = jnp.concatenate(pieces, axis=0)            # [rows_a, n]
        xraw = jnp.concatenate([x, raw], axis=1)             # [n, 2c]
        return call(a_stack, xraw, slab)

    return fwd


# -----------------------------------------------------------------------------
# Pure-JAX reference (same math as the PyTorch module) for a correctness check
# -----------------------------------------------------------------------------
def rlgnn_forward_ref(a, raw, x, layer_params):
    h = x
    for p in layer_params:
        outs = []
        for k in range(3):
            agg = a[k] @ h
            t = jnp.maximum(agg @ p["w1"][k] + p["b1"][k][None, :], 0.0)
            t = jnp.maximum(t @ p["w2"][k] + p["b2"][k][None, :], 0.0)
            t = t @ p["w3"][k] + p["b3"][k][None, :]
            outs.append(jnp.maximum(t, 0.0))
        pooled = jnp.maximum(jnp.sum(h, axis=0, keepdims=True), 0.0)
        pooled = jnp.broadcast_to(pooled, h.shape)
        cat = jnp.concatenate(outs + [pooled, h, raw], axis=1)
        m = jnp.maximum(cat @ p["wm1"] + p["bm1"], 0.0)
        m = jnp.maximum(m @ p["wm2"] + p["bm2"], 0.0)
        h = m @ p["wm3"] + p["bm3"]
    return h


# -----------------------------------------------------------------------------
# Deterministic synthetic parameter init
# -----------------------------------------------------------------------------
def init_layer_params(key, in_c, hid, out_c):
    ks = jax.random.split(key, 12)
    s = 0.1

    def nrm(k, shape):
        return (jax.random.normal(k, shape, jnp.float32) * s).astype(jnp.float32)

    return {
        # three branch MLPs (pre, suc, dis), stacked on leading axis
        "w1": nrm(ks[0], (3, in_c, hid)),
        "b1": nrm(ks[1], (3, hid)),
        "w2": nrm(ks[2], (3, hid, hid)),
        "b2": nrm(ks[3], (3, hid)),
        "w3": nrm(ks[4], (3, hid, out_c)),
        "b3": nrm(ks[5], (3, out_c)),
        # merge MLP
        "wm1": nrm(ks[6], (6 * out_c, hid)),
        "bm1": nrm(ks[7], (1, hid)),
        "wm2": nrm(ks[8], (hid, hid)),
        "bm2": nrm(ks[9], (1, hid)),
        "wm3": nrm(ks[10], (hid, out_c)),
        "bm3": nrm(ks[11], (1, out_c)),
    }


if __name__ == "__main__":
    # small shapes: N=16 nodes, in_chnl=out_chnl=8, hidden_chnl=32, 3 GNN layers
    N, C, H, O = 16, 8, 32, 8
    NUM_LAYERS = 3

    root = jax.random.PRNGKey(0)
    k_a, k_x, k_raw, k_p = jax.random.split(root, 4)

    # dense 0/1 aggregation matrices for the pre / suc / dis graphs
    a = jax.random.bernoulli(k_a, p=0.3, shape=(3, N, N)).astype(jnp.float32)
    x = jax.random.normal(k_x, (N, C), jnp.float32)
    raw = jax.random.normal(k_raw, (N, C), jnp.float32)

    layer_keys = jax.random.split(k_p, NUM_LAYERS)
    # layer 0: in_chnl=C ; layers >0: in_chnl=out_chnl  (C == O, matching module defaults)
    layer_params = [
        init_layer_params(layer_keys[l], C if l == 0 else O, H, O)
        for l in range(NUM_LAYERS)
    ]
    slab = pack_rlgnn_params(layer_params)
    fwd = make_rlgnn_forward(N, C, H, O, NUM_LAYERS)

    out = jax.block_until_ready(fwd(a, raw, x, slab))
    ref = jax.block_until_ready(rlgnn_forward_ref(a, raw, x, layer_params))
    np.testing.assert_allclose(np.asarray(out), np.asarray(ref), rtol=1e-4, atol=1e-4)

    print("KERNEL_OK")
</pallas_src>

<mosaic_0001>
module attributes {stable_mosaic.version = 11 : i64} {
  func.func @kernel(%arg0: memref<48x16xf32, #tpu.memory_space<vmem>>, %arg1: memref<16x16xf32, #tpu.memory_space<vmem>>, %arg2: memref<960x96xf32, #tpu.memory_space<vmem>>, %arg3: memref<16x8xf32, #tpu.memory_space<vmem>>) attributes {dimension_semantics = [], scalar_prefetch = 0 : i64, scratch_operands = 0 : i64, tpu.core_type = #tpu.core_type<tc>} {
    %c0 = arith.constant 0 : index
    %c0_0 = arith.constant 0 : index
    %0 = vector.load %arg0[%c0, %c0_0] : memref<48x16xf32, #tpu.memory_space<vmem>>, vector<48x16xf32>
    %c0_1 = arith.constant 0 : index
    %c0_2 = arith.constant 0 : index
    %1 = vector.load %arg1[%c0_1, %c0_2] : memref<16x16xf32, #tpu.memory_space<vmem>>, vector<16x16xf32>
    %2 = vector.extract_strided_slice %1 {offsets = [0, 0], sizes = [16, 8], strides = [1, 1]} : vector<16x16xf32> to vector<16x8xf32>
    %3 = vector.extract_strided_slice %1 {offsets = [0, 8], sizes = [16, 8], strides = [1, 1]} : vector<16x16xf32> to vector<16x8xf32>
    %4 = tpu.iota {dimensions = array<i32: 0>} : vector<48x24xi32>
    %5 = tpu.iota {dimensions = array<i32: 1>} : vector<48x24xi32>
    %cst = arith.constant 0.000000e+00 : f32
    %6 = vector.broadcast %cst : f32 to vector<48x24xf32>
    %c0_i32 = arith.constant 0 : i32
    %7 = vector.broadcast %c0_i32 : i32 to vector<48x24xi32>
    %8 = arith.cmpi sge, %4, %7 : vector<48x24xi32>
    %c16_i32 = arith.constant 16 : i32
    %9 = vector.broadcast %c16_i32 : i32 to vector<48x24xi32>
    %10 = arith.cmpi slt, %4, %9 : vector<48x24xi32>
    %11 = arith.andi %8, %10 : vector<48x24xi1>
    %c0_i32_3 = arith.constant 0 : i32
    %12 = vector.broadcast %c0_i32_3 : i32 to vector<48x24xi32>
    %13 = arith.cmpi sge, %5, %12 : vector<48x24xi32>
    %14 = arith.andi %11, %13 : vector<48x24xi1>
    %c8_i32 = arith.constant 8 : i32
    %15 = vector.broadcast %c8_i32 : i32 to vector<48x24xi32>
    %16 = arith.cmpi slt, %5, %15 : vector<48x24xi32>
    %17 = arith.andi %14, %16 : vector<48x24xi1>
    %cst_4 = arith.constant 1.000000e+00 : f32
    %18 = vector.broadcast %cst_4 : f32 to vector<48x24xf32>
    %19 = arith.select %17, %18, %6 : vector<48x24xi1>, vector<48x24xf32>
    %c16_i32_5 = arith.constant 16 : i32
    %20 = vector.broadcast %c16_i32_5 : i32 to vector<48x24xi32>
    %21 = arith.cmpi sge, %4, %20 : vector<48x24xi32>
    %c32_i32 = arith.constant 32 : i32
    %22 = vector.broadcast %c32_i32 : i32 to vector<48x24xi32>
    %23 = arith.cmpi slt, %4, %22 : vector<48x24xi32>
    %24 = arith.andi %21, %23 : vector<48x24xi1>
    %c8_i32_6 = arith.constant 8 : i32
    %25 = vector.broadcast %c8_i32_6 : i32 to vector<48x24xi32>
    %26 = arith.cmpi sge, %5, %25 : vector<48x24xi32>
    %27 = arith.andi %24, %26 : vector<48x24xi1>
    %c16_i32_7 = arith.constant 16 : i32
    %28 = vector.broadcast %c16_i32_7 : i32 to vector<48x24xi32>
    %29 = arith.cmpi slt, %5, %28 : vector<48x24xi32>
    %30 = arith.andi %27, %29 : vector<48x24xi1>
    %cst_8 = arith.constant 1.000000e+00 : f32
    %31 = vector.broadcast %cst_8 : f32 to vector<48x24xf32>
    %32 = arith.select %30, %31, %19 : vector<48x24xi1>, vector<48x24xf32>
    %c32_i32_9 = arith.constant 32 : i32
    %33 = vector.broadcast %c32_i32_9 : i32 to vector<48x24xi32>
    %34 = arith.cmpi sge, %4, %33 : vector<48x24xi32>
    %c48_i32 = arith.constant 48 : i32
    %35 = vector.broadcast %c48_i32 : i32 to vector<48x24xi32>
    %36 = arith.cmpi slt, %4, %35 : vector<48x24xi32>
    %37 = arith.andi %34, %36 : vector<48x24xi1>
    %c16_i32_10 = arith.constant 16 : i32
    %38 = vector.broadcast %c16_i32_10 : i32 to vector<48x24xi32>
    %39 = arith.cmpi sge, %5, %38 : vector<48x24xi32>
    %40 = arith.andi %37, %39 : vector<48x24xi1>
    %c24_i32 = arith.constant 24 : i32
    %41 = vector.broadcast %c24_i32 : i32 to vector<48x24xi32>
    %42 = arith.cmpi slt, %5, %41 : vector<48x24xi32>
    %43 = arith.andi %40, %42 : vector<48x24xi1>
    %cst_11 = arith.constant 1.000000e+00 : f32
    %44 = vector.broadcast %cst_11 : f32 to vector<48x24xf32>
    %45 = arith.select %43, %44, %32 : vector<48x24xi1>, vector<48x24xf32>
    %c312 = arith.constant 312 : index
    %c0_12 = arith.constant 0 : index
    %46 = vector.load %arg2[%c312, %c0_12] : memref<960x96xf32, #tpu.memory_space<vmem>>, vector<8x96xf32>
    %47 = vector.extract_strided_slice %46 {offsets = [0, 0], sizes = [1, 96], strides = [1, 1]} : vector<8x96xf32> to vector<1x96xf32>
    %48 = vector.extract_strided_slice %46 {offsets = [1, 0], sizes = [1, 96], strides = [1, 1]} : vector<8x96xf32> to vector<1x96xf32>
    %49 = vector.extract_strided_slice %46 {offsets = [2, 0], sizes = [1, 24], strides = [1, 1]} : vector<8x96xf32> to vector<1x24xf32>
    %50 = vector.extract_strided_slice %46 {offsets = [3, 0], sizes = [1, 32], strides = [1, 1]} : vector<8x96xf32> to vector<1x32xf32>
    %51 = vector.extract_strided_slice %46 {offsets = [4, 0], sizes = [1, 32], strides = [1, 1]} : vector<8x96xf32> to vector<1x32xf32>
    %52 = vector.extract_strided_slice %46 {offsets = [5, 0], sizes = [1, 8], strides = [1, 1]} : vector<8x96xf32> to vector<1x8xf32>
    %cst_13 = arith.constant dense<0.000000e+00> : vector<48x8xf32>
    %53 = tpu.matmul %0, %2, %cst_13 {dimension_numbers = #tpu.dot_dimension_numbers<[1], [0], [0], [1], [0, 0, 1, 1], [], []>} : vector<48x16xf32>, vector<16x8xf32>, vector<48x8xf32> -> vector<48x8xf32>
    %cst_14 = arith.constant dense<0.000000e+00> : vector<8xf32>
    %54 = vector.multi_reduction <add>, %2, %cst_14 [0] : vector<16x8xf32> to vector<8xf32>
    %55 = vector.shape_cast %54 : vector<8xf32> to vector<1x8xf32>
    %cst_15 = arith.constant 0.000000e+00 : f32
    %56 = vector.broadcast %cst_15 : f32 to vector<1x8xf32>
    %57 = arith.maximumf %55, %56 : vector<1x8xf32>
    %c0_16 = arith.constant 0 : index
    %c0_17 = arith.constant 0 : index
    %58 = vector.load %arg2[%c0_16, %c0_17] : memref<960x96xf32, #tpu.memory_space<vmem>>, vector<8x96xf32>
    %cst_18 = arith.constant dense<0.000000e+00> : vector<48x96xf32>
    %59 = tpu.matmul %53, %58, %cst_18 {dimension_numbers = #tpu.dot_dimension_numbers<[1], [0], [0], [1], [0, 0, 1, 1], [], []>} : vector<48x8xf32>, vector<8x96xf32>, vector<48x96xf32> -> vector<48x96xf32>
    %60 = vector.broadcast %47 : vector<1x96xf32> to vector<48x96xf32>
    %61 = arith.addf %59, %60 : vector<48x96xf32>
    %cst_19 = arith.constant 0.000000e+00 : f32
    %62 = vector.broadcast %cst_19 : f32 to vector<48x96xf32>
    %63 = arith.maximumf %61, %62 : vector<48x96xf32>
    %c8 = arith.constant 8 : index
    %c0_20 = arith.constant 0 : index
    %64 = vector.load %arg2[%c8, %c0_20] : memref<960x96xf32, #tpu.memory_space<vmem>>, vector<96x96xf32>
    %cst_21 = arith.constant dense<0.000000e+00> : vector<48x96xf32>
    %65 = tpu.matmul %63, %64, %cst_21 {dimension_numbers = #tpu.dot_dimension_numbers<[1], [0], [0], [1], [0, 0, 1, 1], [], []>} : vector<48x96xf32>, vector<96x96xf32>, vector<48x96xf32> -> vector<48x96xf32>
    %66 = vector.broadcast %48 : vector<1x96xf32> to vector<48x96xf32>
    %67 = arith.addf %65, %66 : vector<48x96xf32>
    %cst_22 = arith.constant 0.000000e+00 : f32
    %68 = vector.broadcast %cst_22 : f32 to vector<48x96xf32>
    %69 = arith.maximumf %67, %68 : vector<48x96xf32>
    %c104 = arith.constant 104 : index
    %c0_23 = arith.constant 0 : index
    %70 = vector.load %arg2[%c104, %c0_23] : memref<960x96xf32, #tpu.memory_space<vmem>>, vector<96x24xf32>
    %cst_24 = arith.constant dense<0.000000e+00> : vector<48x24xf32>
    %71 = tpu.matmul %69, %70, %cst_24 {dimension_numbers = #tpu.dot_dimension_numbers<[1], [0], [0], [1], [0, 0, 1, 1], [], []>} : vector<48x96xf32>, vector<96x24xf32>, vector<48x24xf32> -> vector<48x24xf32>
    %72 = vector.broadcast %49 : vector<1x24xf32> to vector<48x24xf32>
    %73 = arith.addf %71, %72 : vector<48x24xf32>
    %cst_25 = arith.constant 0.000000e+00 : f32
    %74 = vector.broadcast %cst_25 : f32 to vector<48x24xf32>
    %75 = arith.maximumf %73, %74 : vector<48x24xf32>
    %76 = arith.mulf %75, %45 : vector<48x24xf32>
    %c200 = arith.constant 200 : index
    %c0_26 = arith.constant 0 : index
    %77 = vector.load %arg2[%c200, %c0_26] : memref<960x96xf32, #tpu.memory_space<vmem>>, vector<24x32xf32>
    %cst_27 = arith.constant dense<0.000000e+00> : vector<48x32xf32>
    %78 = tpu.matmul %76, %77, %cst_27 {dimension_numbers = #tpu.dot_dimension_numbers<[1], [0], [0], [1], [0, 0, 1, 1], [], []>} : vector<48x24xf32>, vector<24x32xf32>, vector<48x32xf32> -> vector<48x32xf32>
    %c224 = arith.constant 224 : index
    %c0_28 = arith.constant 0 : index
    %79 = vector.load %arg2[%c224, %c0_28] : memref<960x96xf32, #tpu.memory_space<vmem>>, vector<8x32xf32>
    %cst_29 = arith.constant dense<0.000000e+00> : vector<1x32xf32>
    %80 = tpu.matmul %57, %79, %cst_29 {dimension_numbers = #tpu.dot_dimension_numbers<[1], [0], [0], [1], [0, 0, 1, 1], [], []>} : vector<1x8xf32>, vector<8x32xf32>, vector<1x32xf32> -> vector<1x32xf32>
    %c232 = arith.constant 232 : index
    %c0_30 = arith.constant 0 : index
    %81 = vector.load %arg2[%c232, %c0_30] : memref<960x96xf32, #tpu.memory_space<vmem>>, vector<8x32xf32>
    %cst_31 = arith.constant dense<0.000000e+00> : vector<16x32xf32>
    %82 = tpu.matmul %2, %81, %cst_31 {dimension_numbers = #tpu.dot_dimension_numbers<[1], [0], [0], [1], [0, 0, 1, 1], [], []>} : vector<16x8xf32>, vector<8x32xf32>, vector<16x32xf32> -> vector<16x32xf32>
    %83 = vector.broadcast %80 : vector<1x32xf32> to vector<16x32xf32>
    %84 = arith.addf %83, %82 : vector<16x32xf32>
    %c240 = arith.constant 240 : index
    %c0_32 = arith.constant 0 : index
    %85 = vector.load %arg2[%c240, %c0_32] : memref<960x96xf32, #tpu.memory_space<vmem>>, vector<8x32xf32>
    %cst_33 = arith.constant dense<0.000000e+00> : vector<16x32xf32>
    %86 = tpu.matmul %3, %85, %cst_33 {dimension_numbers = #tpu.dot_dimension_numbers<[1], [0], [0], [1], [0, 0, 1, 1], [], []>} : vector<16x8xf32>, vector<8x32xf32>, vector<16x32xf32> -> vector<16x32xf32>
    %87 = arith.addf %84, %86 : vector<16x32xf32>
    %88 = vector.broadcast %50 : vector<1x32xf32> to vector<16x32xf32>
    %89 = arith.addf %87, %88 : vector<16x32xf32>
    %90 = vector.extract_strided_slice %78 {offsets = [0, 0], sizes = [16, 32], strides = [1, 1]} : vector<48x32xf32> to vector<16x32xf32>
    %91 = arith.addf %89, %90 : vector<16x32xf32>
    %92 = vector.extract_strided_slice %78 {offsets = [16, 0], sizes = [16, 32], strides = [1, 1]} : vector<48x32xf32> to vector<16x32xf32>
    %93 = arith.addf %91, %92 : vector<16x32xf32>
    %94 = vector.extract_strided_slice %78 {offsets = [32, 0], sizes = [16, 32], strides = [1, 1]} : vector<48x32xf32> to vector<16x32xf32>
    %95 = arith.addf %93, %94 : vector<16x32xf32>
    %cst_34 = arith.constant 0.000000e+00 : f32
    %96 = vector.broadcast %cst_34 : f32 to vector<16x32xf32>
    %97 = arith.maximumf %95, %96 : vector<16x32xf32>
    %c248 = arith.constant 248 : index
    %c0_35 = arith.constant 0 : index
    %98 = vector.load %arg2[%c248, %c0_35] : memref<960x96xf32, #tpu.memory_space<vmem>>, vector<32x32xf32>
    %cst_36 = arith.constant dense<0.000000e+00> : vector<16x32xf32>
    %99 = tpu.matmul %97, %98, %cst_36 {dimension_numbers = #tpu.dot_dimension_numbers<[1], [0], [0], [1], [0, 0, 1, 1], [], []>} : vector<16x32xf32>, vector<32x32xf32>, vector<16x32xf32> -> vector<16x32xf32>
    %100 = vector.broadcast %51 : vector<1x32xf32> to vector<16x32xf32>
    %101 = arith.addf %99, %100 : vector<16x32xf32>
    %cst_37 = arith.constant 0.000000e+00 : f32
    %102 = vector.broadcast %cst_37 : f32 to vector<16x32xf32>
    %103 = arith.maximumf %101, %102 : vector<16x32xf32>
    %c280 = arith.constant 280 : index
    %c0_38 = arith.constant 0 : index
    %104 = vector.load %arg2[%c280, %c0_38] : memref<960x96xf32, #tpu.memory_space<vmem>>, vector<32x8xf32>
    %cst_39 = arith.constant dense<0.000000e+00> : vector<16x8xf32>
    %105 = tpu.matmul %103, %104, %cst_39 {dimension_numbers = #tpu.dot_dimension_numbers<[1], [0], [0], [1], [0, 0, 1, 1], [], []>} : vector<16x32xf32>, vector<32x8xf32>, vector<16x8xf32> -> vector<16x8xf32>
    %106 = vector.broadcast %52 : vector<1x8xf32> to vector<16x8xf32>
    %107 = arith.addf %105, %106 : vector<16x8xf32>
    %c632 = arith.constant 632 : index
    %c0_40 = arith.constant 0 : index
    %108 = vector.load %arg2[%c632, %c0_40] : memref<960x96xf32, #tpu.memory_space<vmem>>, vector<8x96xf32>
    %109 = vector.extract_strided_slice %108 {offsets = [0, 0], sizes = [1, 96], strides = [1, 1]} : vector<8x96xf32> to vector<1x96xf32>
    %110 = vector.extract_strided_slice %108 {offsets = [1, 0], sizes = [1, 96], strides = [1, 1]} : vector<8x96xf32> to vector<1x96xf32>
    %111 = vector.extract_strided_slice %108 {offsets = [2, 0], sizes = [1, 24], strides = [1, 1]} : vector<8x96xf32> to vector<1x24xf32>
    %112 = vector.extract_strided_slice %108 {offsets = [3, 0], sizes = [1, 32], strides = [1, 1]} : vector<8x96xf32> to vector<1x32xf32>
    %113 = vector.extract_strided_slice %108 {offsets = [4, 0], sizes = [1, 32], strides = [1, 1]} : vector<8x96xf32> to vector<1x32xf32>
    %114 = vector.extract_strided_slice %108 {offsets = [5, 0], sizes = [1, 8], strides = [1, 1]} : vector<8x96xf32> to vector<1x8xf32>
    %cst_41 = arith.constant dense<0.000000e+00> : vector<48x8xf32>
    %115 = tpu.matmul %0, %107, %cst_41 {dimension_numbers = #tpu.dot_dimension_numbers<[1], [0], [0], [1], [0, 0, 1, 1], [], []>} : vector<48x16xf32>, vector<16x8xf32>, vector<48x8xf32> -> vector<48x8xf32>
    %cst_42 = arith.constant dense<0.000000e+00> : vector<8xf32>
    %116 = vector.multi_reduction <add>, %107, %cst_42 [0] : vector<16x8xf32> to vector<8xf32>
    %117 = vector.shape_cast %116 : vector<8xf32> to vector<1x8xf32>
    %cst_43 = arith.constant 0.000000e+00 : f32
    %118 = vector.broadcast %cst_43 : f32 to vector<1x8xf32>
    %119 = arith.maximumf %117, %118 : vector<1x8xf32>
    %c320 = arith.constant 320 : index
    %c0_44 = arith.constant 0 : index
    %120 = vector.load %arg2[%c320, %c0_44] : memref<960x96xf32, #tpu.memory_space<vmem>>, vector<8x96xf32>
    %cst_45 = arith.constant dense<0.000000e+00> : vector<48x96xf32>
    %121 = tpu.matmul %115, %120, %cst_45 {dimension_numbers = #tpu.dot_dimension_numbers<[1], [0], [0], [1], [0, 0, 1, 1], [], []>} : vector<48x8xf32>, vector<8x96xf32>, vector<48x96xf32> -> vector<48x96xf32>
    %122 = vector.broadcast %109 : vector<1x96xf32> to vector<48x96xf32>
    %123 = arith.addf %121, %122 : vector<48x96xf32>
    %cst_46 = arith.constant 0.000000e+00 : f32
    %124 = vector.broadcast %cst_46 : f32 to vector<48x96xf32>
    %125 = arith.maximumf %123, %124 : vector<48x96xf32>
    %c328 = arith.constant 328 : index
    %c0_47 = arith.constant 0 : index
    %126 = vector.load %arg2[%c328, %c0_47] : memref<960x96xf32, #tpu.memory_space<vmem>>, vector<96x96xf32>
    %cst_48 = arith.constant dense<0.000000e+00> : vector<48x96xf32>
    %127 = tpu.matmul %125, %126, %cst_48 {dimension_numbers = #tpu.dot_dimension_numbers<[1], [0], [0], [1], [0, 0, 1, 1], [], []>} : vector<48x96xf32>, vector<96x96xf32>, vector<48x96xf32> -> vector<48x96xf32>
    %128 = vector.broadcast %110 : vector<1x96xf32> to vector<48x96xf32>
    %129 = arith.addf %127, %128 : vector<48x96xf32>
    %cst_49 = arith.constant 0.000000e+00 : f32
    %130 = vector.broadcast %cst_49 : f32 to vector<48x96xf32>
    %131 = arith.maximumf %129, %130 : vector<48x96xf32>
    %c424 = arith.constant 424 : index
    %c0_50 = arith.constant 0 : index
    %132 = vector.load %arg2[%c424, %c0_50] : memref<960x96xf32, #tpu.memory_space<vmem>>, vector<96x24xf32>
    %cst_51 = arith.constant dense<0.000000e+00> : vector<48x24xf32>
    %133 = tpu.matmul %131, %132, %cst_51 {dimension_numbers = #tpu.dot_dimension_numbers<[1], [0], [0], [1], [0, 0, 1, 1], [], []>} : vector<48x96xf32>, vector<96x24xf32>, vector<48x24xf32> -> vector<48x24xf32>
    %134 = vector.broadcast %111 : vector<1x24xf32> to vector<48x24xf32>
    %135 = arith.addf %133, %134 : vector<48x24xf32>
    %cst_52 = arith.constant 0.000000e+00 : f32
    %136 = vector.broadcast %cst_52 : f32 to vector<48x24xf32>
    %137 = arith.maximumf %135, %136 : vector<48x24xf32>
    %138 = arith.mulf %137, %45 : vector<48x24xf32>
    %c520 = arith.constant 520 : index
    %c0_53 = arith.constant 0 : index
    %139 = vector.load %arg2[%c520, %c0_53] : memref<960x96xf32, #tpu.memory_space<vmem>>, vector<24x32xf32>
    %cst_54 = arith.constant dense<0.000000e+00> : vector<48x32xf32>
    %140 = tpu.matmul %138, %139, %cst_54 {dimension_numbers = #tpu.dot_dimension_numbers<[1], [0], [0], [1], [0, 0, 1, 1], [], []>} : vector<48x24xf32>, vector<24x32xf32>, vector<48x32xf32> -> vector<48x32xf32>
    %c544 = arith.constant 544 : index
    %c0_55 = arith.constant 0 : index
    %141 = vector.load %arg2[%c544, %c0_55] : memref<960x96xf32, #tpu.memory_space<vmem>>, vector<8x32xf32>
    %cst_56 = arith.constant dense<0.000000e+00> : vector<1x32xf32>
    %142 = tpu.matmul %119, %141, %cst_56 {dimension_numbers = #tpu.dot_dimension_numbers<[1], [0], [0], [1], [0, 0, 1, 1], [], []>} : vector<1x8xf32>, vector<8x32xf32>, vector<1x32xf32> -> vector<1x32xf32>
    %c552 = arith.constant 552 : index
    %c0_57 = arith.constant 0 : index
    %143 = vector.load %arg2[%c552, %c0_57] : memref<960x96xf32, #tpu.memory_space<vmem>>, vector<8x32xf32>
    %cst_58 = arith.constant dense<0.000000e+00> : vector<16x32xf32>
    %144 = tpu.matmul %107, %143, %cst_58 {dimension_numbers = #tpu.dot_dimension_numbers<[1], [0], [0], [1], [0, 0, 1, 1], [], []>} : vector<16x8xf32>, vector<8x32xf32>, vector<16x32xf32> -> vector<16x32xf32>
    %145 = vector.broadcast %142 : vector<1x32xf32> to vector<16x32xf32>
    %146 = arith.addf %145, %144 : vector<16x32xf32>
    %c560 = arith.constant 560 : index
    %c0_59 = arith.constant 0 : index
    %147 = vector.load %arg2[%c560, %c0_59] : memref<960x96xf32, #tpu.memory_space<vmem>>, vector<8x32xf32>
    %cst_60 = arith.constant dense<0.000000e+00> : vector<16x32xf32>
    %148 = tpu.matmul %3, %147, %cst_60 {dimension_numbers = #tpu.dot_dimension_numbers<[1], [0], [0], [1], [0, 0, 1, 1], [], []>} : vector<16x8xf32>, vector<8x32xf32>, vector<16x32xf32> -> vector<16x32xf32>
    %149 = arith.addf %146, %148 : vector<16x32xf32>
    %150 = vector.broadcast %112 : vector<1x32xf32> to vector<16x32xf32>
    %151 = arith.addf %149, %150 : vector<16x32xf32>
    %152 = vector.extract_strided_slice %140 {offsets = [0, 0], sizes = [16, 32], strides = [1, 1]} : vector<48x32xf32> to vector<16x32xf32>
    %153 = arith.addf %151, %152 : vector<16x32xf32>
    %154 = vector.extract_strided_slice %140 {offsets = [16, 0], sizes = [16, 32], strides = [1, 1]} : vector<48x32xf32> to vector<16x32xf32>
    %155 = arith.addf %153, %154 : vector<16x32xf32>
    %156 = vector.extract_strided_slice %140 {offsets = [32, 0], sizes = [16, 32], strides = [1, 1]} : vector<48x32xf32> to vector<16x32xf32>
    %157 = arith.addf %155, %156 : vector<16x32xf32>
    %cst_61 = arith.constant 0.000000e+00 : f32
    %158 = vector.broadcast %cst_61 : f32 to vector<16x32xf32>
    %159 = arith.maximumf %157, %158 : vector<16x32xf32>
    %c568 = arith.constant 568 : index
    %c0_62 = arith.constant 0 : index
    %160 = vector.load %arg2[%c568, %c0_62] : memref<960x96xf32, #tpu.memory_space<vmem>>, vector<32x32xf32>
    %cst_63 = arith.constant dense<0.000000e+00> : vector<16x32xf32>
    %161 = tpu.matmul %159, %160, %cst_63 {dimension_numbers = #tpu.dot_dimension_numbers<[1], [0], [0], [1], [0, 0, 1, 1], [], []>} : vector<16x32xf32>, vector<32x32xf32>, vector<16x32xf32> -> vector<16x32xf32>
    %162 = vector.broadcast %113 : vector<1x32xf32> to vector<16x32xf32>
    %163 = arith.addf %161, %162 : vector<16x32xf32>
    %cst_64 = arith.constant 0.000000e+00 : f32
    %164 = vector.broadcast %cst_64 : f32 to vector<16x32xf32>
    %165 = arith.maximumf %163, %164 : vector<16x32xf32>
    %c600 = arith.constant 600 : index
    %c0_65 = arith.constant 0 : index
    %166 = vector.load %arg2[%c600, %c0_65] : memref<960x96xf32, #tpu.memory_space<vmem>>, vector<32x8xf32>
    %cst_66 = arith.constant dense<0.000000e+00> : vector<16x8xf32>
    %167 = tpu.matmul %165, %166, %cst_66 {dimension_numbers = #tpu.dot_dimension_numbers<[1], [0], [0], [1], [0, 0, 1, 1], [], []>} : vector<16x32xf32>, vector<32x8xf32>, vector<16x8xf32> -> vector<16x8xf32>
    %168 = vector.broadcast %114 : vector<1x8xf32> to vector<16x8xf32>
    %169 = arith.addf %167, %168 : vector<16x8xf32>
    %c952 = arith.constant 952 : index
    %c0_67 = arith.constant 0 : index
    %170 = vector.load %arg2[%c952, %c0_67] : memref<960x96xf32, #tpu.memory_space<vmem>>, vector<8x96xf32>
    %171 = vector.extract_strided_slice %170 {offsets = [0, 0], sizes = [1, 96], strides = [1, 1]} : vector<8x96xf32> to vector<1x96xf32>
    %172 = vector.extract_strided_slice %170 {offsets = [1, 0], sizes = [1, 96], strides = [1, 1]} : vector<8x96xf32> to vector<1x96xf32>
    %173 = vector.extract_strided_slice %170 {offsets = [2, 0], sizes = [1, 24], strides = [1, 1]} : vector<8x96xf32> to vector<1x24xf32>
    %174 = vector.extract_strided_slice %170 {offsets = [3, 0], sizes = [1, 32], strides = [1, 1]} : vector<8x96xf32> to vector<1x32xf32>
    %175 = vector.extract_strided_slice %170 {offsets = [4, 0], sizes = [1, 32], strides = [1, 1]} : vector<8x96xf32> to vector<1x32xf32>
    %176 = vector.extract_strided_slice %170 {offsets = [5, 0], sizes = [1, 8], strides = [1, 1]} : vector<8x96xf32> to vector<1x8xf32>
    %cst_68 = arith.constant dense<0.000000e+00> : vector<48x8xf32>
    %177 = tpu.matmul %0, %169, %cst_68 {dimension_numbers = #tpu.dot_dimension_numbers<[1], [0], [0], [1], [0, 0, 1, 1], [], []>} : vector<48x16xf32>, vector<16x8xf32>, vector<48x8xf32> -> vector<48x8xf32>
    %cst_69 = arith.constant dense<0.000000e+00> : vector<8xf32>
    %178 = vector.multi_reduction <add>, %169, %cst_69 [0] : vector<16x8xf32> to vector<8xf32>
    %179 = vector.shape_cast %178 : vector<8xf32> to vector<1x8xf32>
    %cst_70 = arith.constant 0.000000e+00 : f32
    %180 = vector.broadcast %cst_70 : f32 to vector<1x8xf32>
    %181 = arith.maximumf %179, %180 : vector<1x8xf32>
    %c640 = arith.constant 640 : index
    %c0_71 = arith.constant 0 : index
    %182 = vector.load %arg2[%c640, %c0_71] : memref<960x96xf32, #tpu.memory_space<vmem>>, vector<8x96xf32>
    %cst_72 = arith.constant dense<0.000000e+00> : vector<48x96xf32>
    %183 = tpu.matmul %177, %182, %cst_72 {dimension_numbers = #tpu.dot_dimension_numbers<[1], [0], [0], [1], [0, 0, 1, 1], [], []>} : vector<48x8xf32>, vector<8x96xf32>, vector<48x96xf32> -> vector<48x96xf32>
    %184 = vector.broadcast %171 : vector<1x96xf32> to vector<48x96xf32>
    %185 = arith.addf %183, %184 : vector<48x96xf32>
    %cst_73 = arith.constant 0.000000e+00 : f32
    %186 = vector.broadcast %cst_73 : f32 to vector<48x96xf32>
    %187 = arith.maximumf %185, %186 : vector<48x96xf32>
    %c648 = arith.constant 648 : index
    %c0_74 = arith.constant 0 : index
    %188 = vector.load %arg2[%c648, %c0_74] : memref<960x96xf32, #tpu.memory_space<vmem>>, vector<96x96xf32>
    %cst_75 = arith.constant dense<0.000000e+00> : vector<48x96xf32>
    %189 = tpu.matmul %187, %188, %cst_75 {dimension_numbers = #tpu.dot_dimension_numbers<[1], [0], [0], [1], [0, 0, 1, 1], [], []>} : vector<48x96xf32>, vector<96x96xf32>, vector<48x96xf32> -> vector<48x96xf32>
    %190 = vector.broadcast %172 : vector<1x96xf32> to vector<48x96xf32>
    %191 = arith.addf %189, %190 : vector<48x96xf32>
    %cst_76 = arith.constant 0.000000e+00 : f32
    %192 = vector.broadcast %cst_76 : f32 to vector<48x96xf32>
    %193 = arith.maximumf %191, %192 : vector<48x96xf32>
    %c744 = arith.constant 744 : index
    %c0_77 = arith.constant 0 : index
    %194 = vector.load %arg2[%c744, %c0_77] : memref<960x96xf32, #tpu.memory_space<vmem>>, vector<96x24xf32>
    %cst_78 = arith.constant dense<0.000000e+00> : vector<48x24xf32>
    %195 = tpu.matmul %193, %194, %cst_78 {dimension_numbers = #tpu.dot_dimension_numbers<[1], [0], [0], [1], [0, 0, 1, 1], [], []>} : vector<48x96xf32>, vector<96x24xf32>, vector<48x24xf32> -> vector<48x24xf32>
    %196 = vector.broadcast %173 : vector<1x24xf32> to vector<48x24xf32>
    %197 = arith.addf %195, %196 : vector<48x24xf32>
    %cst_79 = arith.constant 0.000000e+00 : f32
    %198 = vector.broadcast %cst_79 : f32 to vector<48x24xf32>
    %199 = arith.maximumf %197, %198 : vector<48x24xf32>
    %200 = arith.mulf %199, %45 : vector<48x24xf32>
    %c840 = arith.constant 840 : index
    %c0_80 = arith.constant 0 : index
    %201 = vector.load %arg2[%c840, %c0_80] : memref<960x96xf32, #tpu.memory_space<vmem>>, vector<24x32xf32>
    %cst_81 = arith.constant dense<0.000000e+00> : vector<48x32xf32>
    %202 = tpu.matmul %200, %201, %cst_81 {dimension_numbers = #tpu.dot_dimension_numbers<[1], [0], [0], [1], [0, 0, 1, 1], [], []>} : vector<48x24xf32>, vector<24x32xf32>, vector<48x32xf32> -> vector<48x32xf32>
    %c864 = arith.constant 864 : index
    %c0_82 = arith.constant 0 : index
    %203 = vector.load %arg2[%c864, %c0_82] : memref<960x96xf32, #tpu.memory_space<vmem>>, vector<8x32xf32>
    %cst_83 = arith.constant dense<0.000000e+00> : vector<1x32xf32>
    %204 = tpu.matmul %181, %203, %cst_83 {dimension_numbers = #tpu.dot_dimension_numbers<[1], [0], [0], [1], [0, 0, 1, 1], [], []>} : vector<1x8xf32>, vector<8x32xf32>, vector<1x32xf32> -> vector<1x32xf32>
    %c872 = arith.constant 872 : index
    %c0_84 = arith.constant 0 : index
    %205 = vector.load %arg2[%c872, %c0_84] : memref<960x96xf32, #tpu.memory_space<vmem>>, vector<8x32xf32>
    %cst_85 = arith.constant dense<0.000000e+00> : vector<16x32xf32>
    %206 = tpu.matmul %169, %205, %cst_85 {dimension_numbers = #tpu.dot_dimension_numbers<[1], [0], [0], [1], [0, 0, 1, 1], [], []>} : vector<16x8xf32>, vector<8x32xf32>, vector<16x32xf32> -> vector<16x32xf32>
    %207 = vector.broadcast %204 : vector<1x32xf32> to vector<16x32xf32>
    %208 = arith.addf %207, %206 : vector<16x32xf32>
    %c880 = arith.constant 880 : index
    %c0_86 = arith.constant 0 : index
    %209 = vector.load %arg2[%c880, %c0_86] : memref<960x96xf32, #tpu.memory_space<vmem>>, vector<8x32xf32>
    %cst_87 = arith.constant dense<0.000000e+00> : vector<16x32xf32>
    %210 = tpu.matmul %3, %209, %cst_87 {dimension_numbers = #tpu.dot_dimension_numbers<[1], [0], [0], [1], [0, 0, 1, 1], [], []>} : vector<16x8xf32>, vector<8x32xf32>, vector<16x32xf32> -> vector<16x32xf32>
    %211 = arith.addf %208, %210 : vector<16x32xf32>
    %212 = vector.broadcast %174 : vector<1x32xf32> to vector<16x32xf32>
    %213 = arith.addf %211, %212 : vector<16x32xf32>
    %214 = vector.extract_strided_slice %202 {offsets = [0, 0], sizes = [16, 32], strides = [1, 1]} : vector<48x32xf32> to vector<16x32xf32>
    %215 = arith.addf %213, %214 : vector<16x32xf32>
    %216 = vector.extract_strided_slice %202 {offsets = [16, 0], sizes = [16, 32], strides = [1, 1]} : vector<48x32xf32> to vector<16x32xf32>
    %217 = arith.addf %215, %216 : vector<16x32xf32>
    %218 = vector.extract_strided_slice %202 {offsets = [32, 0], sizes = [16, 32], strides = [1, 1]} : vector<48x32xf32> to vector<16x32xf32>
    %219 = arith.addf %217, %218 : vector<16x32xf32>
    %cst_88 = arith.constant 0.000000e+00 : f32
    %220 = vector.broadcast %cst_88 : f32 to vector<16x32xf32>
    %221 = arith.maximumf %219, %220 : vector<16x32xf32>
    %c888 = arith.constant 888 : index
    %c0_89 = arith.constant 0 : index
    %222 = vector.load %arg2[%c888, %c0_89] : memref<960x96xf32, #tpu.memory_space<vmem>>, vector<32x32xf32>
    %cst_90 = arith.constant dense<0.000000e+00> : vector<16x32xf32>
    %223 = tpu.matmul %221, %222, %cst_90 {dimension_numbers = #tpu.dot_dimension_numbers<[1], [0], [0], [1], [0, 0, 1, 1], [], []>} : vector<16x32xf32>, vector<32x32xf32>, vector<16x32xf32> -> vector<16x32xf32>
    %224 = vector.broadcast %175 : vector<1x32xf32> to vector<16x32xf32>
    %225 = arith.addf %223, %224 : vector<16x32xf32>
    %cst_91 = arith.constant 0.000000e+00 : f32
    %226 = vector.broadcast %cst_91 : f32 to vector<16x32xf32>
    %227 = arith.maximumf %225, %226 : vector<16x32xf32>
    %c920 = arith.constant 920 : index
    %c0_92 = arith.constant 0 : index
    %228 = vector.load %arg2[%c920, %c0_92] : memref<960x96xf32, #tpu.memory_space<vmem>>, vector<32x8xf32>
    %cst_93 = arith.constant dense<0.000000e+00> : vector<16x8xf32>
    %229 = tpu.matmul %227, %228, %cst_93 {dimension_numbers = #tpu.dot_dimension_numbers<[1], [0], [0], [1], [0, 0, 1, 1], [], []>} : vector<16x32xf32>, vector<32x8xf32>, vector<16x8xf32> -> vector<16x8xf32>
    %230 = vector.broadcast %176 : vector<1x8xf32> to vector<16x8xf32>
    %231 = arith.addf %229, %230 : vector<16x8xf32>
    %c0_94 = arith.constant 0 : index
    %c0_95 = arith.constant 0 : index
    %232 = vector.load %arg3[%c0_94, %c0_95] : memref<16x8xf32, #tpu.memory_space<vmem>>, vector<16x8xf32>
    tpu.vector_store %arg3[%c0_94, %c0_95], %231 {strides = array<i32>} : memref<16x8xf32, #tpu.memory_space<vmem>>, vector<16x8xf32>,
    return
  }
}

</mosaic_0001>

<bundles_post_ra>
// kernel: fwd.1
= control target key start
LH: loop header
LB: loop body
LE: loop exit
PB: predicated region body
PF: predicated region fallthrough
CT: control target
= control target key end

     0   :  { %vm146_vm0 = vcmask 130048   ;;  %vm200_vm1 = vcmask 64512   ;;  %vm285_vm2 = vcmask 785408   ;;  %s1732_s14 = smov 120   ;;  %vm426_vm4 = vcmask 195584   ;;  %s2369_s1 = inlined_call_operand.vmem [shape: f32[16,16], index: 1, kind: input, shape index: {}]   ;;  %s2370_s0 = inlined_call_operand.vmem [shape: f32[48,16], index: 0, kind: input, shape index: {}]   ;;  %s2371_s2 = inlined_call_operand.vmem [shape: f32[960,96], index: 2, kind: input, shape index: {}]   ;;  %s2372_s3 = inlined_call_operand.vmem [shape: f32[16,8], index: 3, kind: output, shape index: {}]  }
   0x1   :  { %v1757_v0 = vld [vmem:[%s2369_s1 + $0x8] sm:$0xff]  ;;  %v1762_v1 = vld [vmem:[%s2369_s1] sm:$0xff]  ;;  %v1783_v4 = vld [vmem:[%s2370_s0 + $0x10] sm:$0xff]  ;;  %vm587_vm11 = vcmask 261120  }
   0x2   :  { %179 = vmatpush.msra.mxu0 %v1757_v0  ;;  %v1768_v2 = vld [vmem:[%s2370_s0] sm:$0xff]  ;;  %v1776_v3 = vld [vmem:[%s2370_s0 + $0x8] sm:$0xff]  ;;  %v1790_v5 = vld [vmem:[%s2370_s0 + $0x18] sm:$0xff]  ;;  %538 = vrot.lane.b32.xlu0 %v1762_v1, %s1732_s14  ;;  %v202_v60 = vsel %vm200_vm1, %v1757_v0, 0.0  ;;  %v201_v61 = vsel %vm200_vm1, %v1762_v1, 0.0 }
   0x3   :  { %v1797_v6 = vld [vmem:[%s2370_s0 + $0x20] sm:$0xff]  ;;  %v1804_v7 = vld [vmem:[%s2370_s0 + $0x28] sm:$0xff]  ;;  %v282_v12 = vld [vmem:[%s2371_s2 + $0x58] sm:$0xff]  ;;  %v203_v63 = vadd.f32 %v202_v60, %v201_v61 }
   0x4   :  { %180 = vmatpush.msra.mxu0 %v1762_v1  ;;  %v211_v8 = vld [vmem:[%s2371_s2] sm:$0xff]  ;;  %v281_v13 = vld [vmem:[%s2371_s2 + $0x50] sm:$0xff]  ;;  %v280_v14 = vld [vmem:[%s2371_s2 + $0x48] sm:$0xff] }
   0x5   :  { %1613 = vmatmul.msk.f32.vlgmr.msra.gmra.mxu0 %vm146_vm0, %v1768_v2  ;;  %246 = vmatpush.msra.mxu1 %v211_v8  ;;  %v283_v11 = vld [vmem:[%s2371_s2 + $0x60] sm:$0xff]  ;;  %v278_v17 = vld [vmem:[%s2371_s2 + $0x38] sm:$0xff]  ;;  %v277_v18 = vld [vmem:[%s2371_s2 + $0x30] sm:$0xff] }
   0x6   :  { %308 = vmatpush.msra.mxu2 %v283_v11  ;;  %v279_v15 = vld [vmem:[%s2371_s2 + $0x40] sm:$0xff]  ;;  %v276_v19 = vld [vmem:[%s2371_s2 + $0x28] sm:$0xff]  ;;  %v274_v24 = vld [vmem:[%s2371_s2 + $0x18] sm:$0xff] }
   0x7   :  { %v275_v20 = vld [vmem:[%s2371_s2 + $0x20] sm:$0xff]  ;;  %v273_v25 = vld [vmem:[%s2371_s2 + $0x10] sm:$0xff]  ;;  %v272_v26 = vld [vmem:[%s2371_s2 + $0x8] sm:$0xff] }
   0x8   :  { %309 = vmatpush.msra.mxu2 %v282_v12  ;;  %v1856_v27 = vld [vmem:[%s2371_s2 + $0x138] sm:$0xff]  ;;  %v356_v35 = vld [vmem:[%s2371_s2 + $0xc0] sm:$0xff]  ;;  %v354_v37 = vld [vmem:[%s2371_s2 + $0xb0] sm:$0xff] }
   0x9   :  { %v212_v28 = vperm.slane %v1856_v27, 0  ;;  %v355_v36 = vld [vmem:[%s2371_s2 + $0xb8] sm:$0xff]  ;;  %380 = vmatpush.msra.mxu3 %v356_v35  ;;  %v353_v40 = vld [vmem:[%s2371_s2 + $0xa8] sm:$0xff]  ;;  %v352_v42 = vld [vmem:[%s2371_s2 + $0xa0] sm:$0xff]  ;;  %v284_v59 = vperm.slane %v1856_v27, 1 }
   0xa   :  { %310 = vmatpush.msra.mxu2 %v281_v13  ;;  %v351_v43 = vld [vmem:[%s2371_s2 + $0x98] sm:$0xff]  ;;  %v350_v44 = vld [vmem:[%s2371_s2 + $0x90] sm:$0xff]  ;;  %v349_v47 = vld [vmem:[%s2371_s2 + $0x88] sm:$0xff]  ;;  %540 = vrot.lane.b32.xlu0 %v1757_v0, %s1732_s14 }
   0xb   :  { %381 = vmatpush.msra.mxu3 %v355_v36  ;;  %v348_v49 = vld [vmem:[%s2371_s2 + $0x80] sm:$0xff]  ;;  %v347_v56 = vld [vmem:[%s2371_s2 + $0x78] sm:$0xff]  ;;  %v346_v57 = vld [vmem:[%s2371_s2 + $0x70] sm:$0xff] }
   0xc   :  { %311 = vmatpush.msra.mxu2 %v280_v14  ;;  %v345_v58 = vld [vmem:[%s2371_s2 + $0x68] sm:$0xff] }
   0xd   :  { %1614 = vmatmul.msk.f32.gmra.mxu0 %vm146_vm0, %v1776_v3  ;;  %382 = vmatpush.msra.mxu3 %v354_v37 }
   0xe   :  { %312 = vmatpush.msra.mxu2 %v279_v15  ;;  %v425_v15 = vld [vmem:[%s2371_s2 + $0xd8] sm:$0xff] }
   0xf   :  { %383 = vmatpush.msra.mxu3 %v353_v40  ;;  %458 = vmatpush.msrb.mxu1 %v425_v15  ;;  %v423_v40 = vld [vmem:[%s2371_s2 + $0xc8] sm:$0xff] }
  0x10   :  { %313 = vmatpush.msra.mxu2 %v278_v17  ;;  %v424_v17 = vld [vmem:[%s2371_s2 + $0xd0] sm:$0xff]  ;;  %v584_v15 = vld [vmem:[%s2371_s2 + $0x108] sm:$0xff] }
  0x11   :  { %384 = vmatpush.msra.mxu3 %v352_v42  ;;  %459 = vmatpush.msrb.mxu1 %v424_v17 }
  0x12   :  { %314 = vmatpush.msra.mxu2 %v277_v18 }
  0x13   :  { %385 = vmatpush.msra.mxu3 %v351_v43  ;;  %460 = vmatpush.msrb.mxu1 %v423_v40  ;;  %v357_v43 = vperm.slane %v1856_v27, 2 }
  0x14   :  { %315 = vmatpush.msra.mxu2 %v276_v19 }
  0x15   :  { %1615 = vmatmul.msk.f32.gmra.mxu0 %vm146_vm0, %v1783_v4  ;;  %386 = vmatpush.msra.mxu3 %v350_v44 }
  0x16   :  { %316 = vmatpush.msra.mxu2 %v275_v20  ;;  %v537_v20 = vld [vmem:[%s2371_s2 + $0xf0] sm:$0xff] }
  0x17   :  { %387 = vmatpush.msra.mxu3 %v349_v47 }
  0x18   :  { %317 = vmatpush.msra.mxu2 %v274_v24 }
  0x19   :  { %388 = vmatpush.msra.mxu3 %v348_v49 }
  0x1a   :  { %318 = vmatpush.msra.mxu2 %v273_v25 }
  0x1b   :  { %389 = vmatpush.msra.mxu3 %v347_v56 }
  0x1c   :  { %319 = vmatpush.msra.mxu2 %v272_v26 }
  0x1d   :  { %1616 = vmatmul.msk.f32.gmra.mxu0 %vm146_vm0, %v1790_v5  ;;  %390 = vmatpush.msra.mxu3 %v346_v57 }
  0x1e   :  { %561 = vmatpush.msrb.mxu2 %v537_v20  ;;  %v582_v20 = vld [vmem:[%s2371_s2 + $0xf8] sm:$0xff] }
  0x1f   :  { %391 = vmatpush.msra.mxu3 %v345_v58 }
  0x25   :  { %1617 = vmatmul.msk.f32.gmra.mxu0 %vm146_vm0, %v1797_v6 }
  0x2d   :  { %1618 = vmatmul.msk.f32.gmra.mxu0 %vm146_vm0, %v1804_v7 }
  0x74   :  { %v1919_v19 = vpop.permute.xlu0 %538 }
  0x82   :  { %v182_v9 = vpop.f32.mrf.mxu0 }
  0x83   :  { %1619 = vmatmul.msk.f32.vlgmr.msra.gmra.mxu1 %vm200_vm1, %v182_v9 }
  0x8a   :  { %v185_v10 = vpop.f32.mrf.mxu0 }
  0x8b   :  { %1620 = vmatmul.msk.f32.gmra.mxu1 %vm200_vm1, %v185_v10  ;;  %v204_v10 = vrot.slane %v203_v63, 4 }
  0x8d   :  { %v205_v12 = vadd.f32 %v204_v10, %v203_v63 }
  0x8f   :  { %v206_v18 = vrot.slane %v205_v12, 2 }
  0x92   :  { %v188_v16 = vpop.f32.mrf.mxu0 }
  0x93   :  { %1621 = vmatmul.msk.f32.gmra.mxu1 %vm200_vm1, %v188_v16  ;;  %v480_v16 = vld [vmem:[%s2371_s2 + $0xe0] sm:$0xff] }
  0x94   :  { %499 = vmatpush.msrb.mxu0 %v480_v16  ;;  %v583_v16 = vld [vmem:[%s2371_s2 + $0x100] sm:$0xff] }
  0x9a   :  { %v191_v21 = vpop.f32.mrf.mxu0 }
  0x9b   :  { %1622 = vmatmul.msk.f32.gmra.mxu1 %vm200_vm1, %v191_v21  ;;  %v207_v21 = vadd.f32 %v206_v18, %v205_v12 }
  0x9d   :  { %v208_v24 = vrot.slane %v207_v21, 1 }
  0x9f   :  { %v209_v26 = vadd.f32 %v208_v24, %v207_v21  ;;  %v622_v24 = vld [vmem:[%s2371_s2 + $0x130] sm:$0xff] }
  0xa2   :  { %v194_v22 = vpop.f32.mrf.mxu0 }
  0xa3   :  { %1623 = vmatmul.msk.f32.gmra.mxu1 %vm200_vm1, %v194_v22 }
  0xaa   :  { %v197_v23 = vpop.f32.mrf.mxu0 }
  0xab   :  { %1624 = vmatmul.msk.f32.gmra.mxu1 %vm200_vm1, %v197_v23 }
 0x100   :  { %v248_v29 = vpop.f32.mrf.mxu1 }
 0x101   :  { %v249_v30 = vadd.f32 %v248_v29, %v212_v28 }
 0x103   :  { %v266_v31 = vmax.f32 %v249_v30, 0.0 }
 0x105   :  { %1625 = vmatmul.msk.f32.vlgmr.msra.gmra.mxu2 %vm285_vm2, %v266_v31 }
 0x108   :  { %v251_v32 = vpop.f32.mrf.mxu1 }
 0x109   :  { %v252_v33 = vadd.f32 %v251_v32, %v212_v28 }
 0x10b   :  { %v267_v34 = vmax.f32 %v252_v33, 0.0 }
 0x10d   :  { %1626 = vmatmul.msk.f32.gmra.mxu2 %vm285_vm2, %v267_v34 }
 0x110   :  { %v254_v38 = vpop.f32.mrf.mxu1 }
 0x111   :  { %v255_v39 = vadd.f32 %v254_v38, %v212_v28  ;;  %v504_v38 = vld [vmem:[%s2371_s2 + $0xe8] sm:$0xff] }
 0x112   :  { %526 = vmatpush.msra.mxu0 %v504_v38 }
 0x113   :  { %v268_v41 = vmax.f32 %v255_v39, 0.0  ;;  %v1936_v39 = vpop.permute.xlu0 %540 }
 0x115   :  { %1627 = vmatmul.msk.f32.gmra.mxu2 %vm285_vm2, %v268_v41  ;;  %v29_v41 = vlaneseq }
 0x117   :  { %v30_v42 = vand.u32 127, %v29_v41 }
 0x118   :  { %v257_v45 = vpop.f32.mrf.mxu1 }
 0x119   :  { %v258_v46 = vadd.f32 %v257_v45, %v212_v28  ;;  %vm56_vm3 = vcmp.lt.s32.totalorder %v30_v42, 8  ;;  %v1733_v45 = vmov 0.0   ;;  %vm87_vm5 = vcmp.ge.s32.totalorder %v30_v42, 8 }
 0x11a   :  { %vm94_vm6 = vcmp.lt.s32.totalorder %v30_v42, 16  ;;  %vm125_vm8 = vcmp.ge.s32.totalorder %v30_v42, 16  ;;  %vm132_vm9 = vcmp.lt.s32.totalorder %v30_v42, 24 }
 0x11b   :  { %v269_v48 = vmax.f32 %v258_v46, 0.0  ;;  %v1946_v46 = vsel %vm56_vm3, 1.0, %v1733_v45  ;;  %vm97_vm7 = vmand %vm87_vm5, %vm94_vm6 }
 0x11c   :  { %vm137_vm10 = vmand %vm125_vm8, %vm132_vm9 }
 0x11d   :  { %1628 = vmatmul.msk.f32.gmra.mxu2 %vm285_vm2, %v269_v48  ;;  %v1958_v63 = vsel %vm137_vm10, 1.0, %v1733_v45 }
 0x120   :  { %v260_v50 = vpop.f32.mrf.mxu1 }
 0x121   :  { %v261_v51 = vadd.f32 %v260_v50, %v212_v28 }
 0x123   :  { %v270_v52 = vmax.f32 %v261_v51, 0.0 }
 0x125   :  { %1629 = vmatmul.msk.f32.gmra.mxu2 %vm285_vm2, %v270_v52 }
 0x128   :  { %v263_v53 = vpop.f32.mrf.mxu1 }
 0x129   :  { %v264_v54 = vadd.f32 %v263_v53, %v212_v28  ;;  %v210_v28 = vmax.f32 %v209_v26, 0.0 }
 0x12b   :  { %v271_v55 = vmax.f32 %v264_v54, 0.0  ;;  %1643 = vmatmul.msk.f32.vlgmr.msrb.gmra.mxu0 %vm200_vm1, %v210_v28  ;;  %v1952_v54 = vsel %vm97_vm7, 1.0, %v1733_v45 }
 0x12c   :  { %642 = vmatpush.msrb.mxu0 %v622_v24  ;;  %v770_v24 = vld [vmem:[%s2371_s2 + $0x198] sm:$0xff] }
 0x12d   :  { %1630 = vmatmul.msk.f32.gmra.mxu2 %vm285_vm2, %v271_v55 }
 0x133   :  { %1644 = vmatmul.msk.f32.vlgmr.msra.gmra.mxu0 %vm200_vm1, %v1762_v1 }
 0x135   :  { %1646 = vmatmul.msk.f32.vlgmr.msrb.gmra.mxu2 %vm200_vm1, %v1919_v19 }
 0x13b   :  { %1645 = vmatmul.msk.f32.gmra.mxu0 %vm200_vm1, %v1757_v0 }
 0x13d   :  { %1647 = vmatmul.msk.f32.gmra.mxu2 %vm200_vm1, %v1936_v39 }
 0x188   :  { %v321_v62 = vpop.f32.mrf.mxu2 }
 0x189   :  { %v322_v8 = vadd.f32 %v321_v62, %v284_v59 }
 0x18b   :  { %v339_v9 = vmax.f32 %v322_v8, 0.0 }
 0x18d   :  { %1631 = vmatmul.msk.f32.vlgmr.msra.gmra.mxu3 %vm285_vm2, %v339_v9 }
 0x190   :  { %v324_v11 = vpop.f32.mrf.mxu2 }
 0x191   :  { %v325_v13 = vadd.f32 %v324_v11, %v284_v59 }
 0x193   :  { %v340_v14 = vmax.f32 %v325_v13, 0.0 }
 0x195   :  { %1632 = vmatmul.msk.f32.gmra.mxu3 %vm285_vm2, %v340_v14  ;;  %v585_v14 = vld [vmem:[%s2371_s2 + $0x110] sm:$0xff] }
 0x196   :  { %606 = vmatpush.msrb.mxu3 %v585_v14  ;;  %v990_v14 = vld [vmem:[%s2371_s2 + $0x228] sm:$0xff] }
 0x198   :  { %v327_v22 = vpop.f32.mrf.mxu2  ;;  %607 = vmatpush.msrb.mxu3 %v584_v15 }
 0x199   :  { %v328_v23 = vadd.f32 %v327_v22, %v284_v59 }
 0x19a   :  { %608 = vmatpush.msrb.mxu3 %v583_v16 }
 0x19b   :  { %v341_v25 = vmax.f32 %v328_v23, 0.0 }
 0x19c   :  { %609 = vmatpush.msrb.mxu3 %v582_v20 }
 0x19d   :  { %1633 = vmatmul.msk.f32.gmra.mxu3 %vm285_vm2, %v341_v25 }
 0x1a0   :  { %v330_v29 = vpop.f32.mrf.mxu2 }
 0x1a1   :  { %v331_v30 = vadd.f32 %v330_v29, %v284_v59 }
 0x1a3   :  { %v342_v31 = vmax.f32 %v331_v30, 0.0  ;;  %v571_v30 = vperm.slane %v1856_v27, 3 }
 0x1a5   :  { %1634 = vmatmul.msk.f32.gmra.mxu3 %vm285_vm2, %v342_v31 }
 0x1a8   :  { %v333_v32 = vpop.f32.mrf.mxu2  ;;  %v501_v18 = vpop.f32.mrf.mxu0 }
 0x1a9   :  { %v334_v33 = vadd.f32 %v333_v32, %v284_v59  ;;  %v534_v23 = vperm.slane %v501_v18, 0 }
 0x1ab   :  { %v343_v34 = vmax.f32 %v334_v33, 0.0 }
 0x1ad   :  { %1635 = vmatmul.msk.f32.gmra.mxu3 %vm285_vm2, %v343_v34 }
 0x1b0   :  { %v336_v35 = vpop.f32.mrf.mxu2  ;;  %v528_v22 = vpop.f32.mrf.mxu0 }
 0x1b1   :  { %v337_v36 = vadd.f32 %v336_v35, %v284_v59  ;;  %v535_v28 = vadd.f32 %v534_v23, %v528_v22 }
 0x1b3   :  { %v344_v37 = vmax.f32 %v337_v36, 0.0 }
 0x1b5   :  { %1636 = vmatmul.msk.f32.gmra.mxu3 %vm285_vm2, %v344_v37 }
 0x1b8   :  { %v563_v25 = vpop.f32.mrf.mxu2  ;;  %v531_v31 = vpop.f32.mrf.mxu0 }
 0x1b9   :  { %v569_v29 = vadd.f32 %v563_v25, %v535_v28  ;;  %v536_v34 = vadd.f32 %v534_v23, %v531_v31  ;;  %v771_v23 = vld [vmem:[%s2371_s2 + $0x1a0] sm:$0xff]  ;;  %v768_v28 = vld [vmem:[%s2371_s2 + $0x188] sm:$0xff] }
 0x1ba   :  { %795 = vmatpush.msra.mxu1 %v771_v23 }
 0x1bb   :  { %v572_v33 = vadd.f32 %v571_v30, %v569_v29 }
 0x1bc   :  { %796 = vmatpush.msra.mxu1 %v770_v24 }
 0x1c0   :  { %v566_v35 = vpop.f32.mrf.mxu2 }
 0x1c1   :  { %v570_v37 = vadd.f32 %v566_v35, %v536_v34  ;;  %v765_v34 = vld [vmem:[%s2371_s2 + $0x170] sm:$0xff]  ;;  %v764_v35 = vld [vmem:[%s2371_s2 + $0x168] sm:$0xff] }
 0x1c3   :  { %v573_v41 = vadd.f32 %v571_v30, %v570_v37  ;;  %v767_v30 = vld [vmem:[%s2371_s2 + $0x180] sm:$0xff] }
 0x1c4   :  { %v763_v37 = vld [vmem:[%s2371_s2 + $0x160] sm:$0xff] }
 0x210   :  { %v393_v44 = vpop.f32.mrf.mxu3 }
 0x211   :  { %v394_v1 = vadd.f32 %v393_v44, %v357_v43 }
 0x213   :  { %v411_v47 = vmax.f32 %v394_v1, 0.0 }
 0x215   :  { %v417_v48 = vmul.f32 %v411_v47, %v1946_v46 }
 0x217   :  { %1637 = vmatmul.msk.f32.vlgmr.msrb.gmra.mxu1 %vm426_vm4, %v417_v48 }
 0x218   :  { %v396_v49 = vpop.f32.mrf.mxu3 }
 0x219   :  { %v397_v50 = vadd.f32 %v396_v49, %v357_v43  ;;  %v621_v49 = vld [vmem:[%s2371_s2 + $0x128] sm:$0xff] }
 0x21a   :  { %643 = vmatpush.msrb.mxu0 %v621_v49 }
 0x21b   :  { %v412_v51 = vmax.f32 %v397_v50, 0.0  ;;  %v620_v50 = vld [vmem:[%s2371_s2 + $0x120] sm:$0xff] }
 0x21c   :  { %644 = vmatpush.msrb.mxu0 %v620_v50 }
 0x21d   :  { %v418_v0 = vmul.f32 %v412_v51, %v1946_v46  ;;  %v619_v51 = vld [vmem:[%s2371_s2 + $0x118] sm:$0xff] }
 0x21e   :  { %645 = vmatpush.msrb.mxu0 %v619_v51 }
 0x21f   :  { %1638 = vmatmul.msk.f32.gmra.mxu1 %vm426_vm4, %v418_v0  ;;  %v586_v0 = vperm.slane %v1856_v27, 4 }
 0x220   :  { %v399_v52 = vpop.f32.mrf.mxu3 }
 0x221   :  { %v400_v53 = vadd.f32 %v399_v52, %v357_v43 }
 0x223   :  { %v413_v55 = vmax.f32 %v400_v53, 0.0 }
 0x225   :  { %v419_v56 = vmul.f32 %v413_v55, %v1952_v54 }
 0x227   :  { %1639 = vmatmul.msk.f32.gmra.mxu1 %vm426_vm4, %v419_v56 }
 0x228   :  { %v402_v57 = vpop.f32.mrf.mxu3 }
 0x229   :  { %v403_v58 = vadd.f32 %v402_v57, %v357_v43 }
 0x22b   :  { %v414_v59 = vmax.f32 %v403_v58, 0.0 }
 0x22d   :  { %v420_v60 = vmul.f32 %v414_v59, %v1952_v54 }
 0x22f   :  { %1640 = vmatmul.msk.f32.gmra.mxu1 %vm426_vm4, %v420_v60  ;;  %v623_v60 = vperm.slane %v1856_v27, 5 }
 0x230   :  { %v405_v61 = vpop.f32.mrf.mxu3 }
 0x231   :  { %v406_v62 = vadd.f32 %v405_v61, %v357_v43 }
 0x233   :  { %v415_v8 = vmax.f32 %v406_v62, 0.0 }
 0x235   :  { %v421_v9 = vmul.f32 %v415_v8, %v1958_v63 }
 0x237   :  { %1641 = vmatmul.msk.f32.gmra.mxu1 %vm426_vm4, %v421_v9  ;;  %v699_v9 = vld [vmem:[%s2371_s2 + $0x140] sm:$0xff] }
 0x238   :  { %v408_v10 = vpop.f32.mrf.mxu3  ;;  %734 = vmatpush.msra.mxu3 %v699_v9  ;;  %v839_v9 = vld [vmem:[%s2371_s2 + $0x1e0] sm:$0xff] }
 0x239   :  { %v409_v11 = vadd.f32 %v408_v10, %v357_v43 }
 0x23b   :  { %v416_v12 = vmax.f32 %v409_v11, 0.0  ;;  %v966_v11 = vld [vmem:[%s2371_s2 + $0x220] sm:$0xff] }
 0x23d   :  { %v422_v13 = vmul.f32 %v416_v12, %v1958_v63 }
 0x23f   :  { %1642 = vmatmul.msk.f32.gmra.mxu1 %vm426_vm4, %v422_v13 }
 0x294   :  { %v462_v17 = vpop.f32.mrf.mxu1 }
 0x295   :  { %v574_v36 = vadd.f32 %v572_v33, %v462_v17 }
 0x29c   :  { %v465_v21 = vpop.f32.mrf.mxu1 }
 0x29d   :  { %v575_v44 = vadd.f32 %v573_v41, %v465_v21  ;;  %v760_v41 = vld [vmem:[%s2371_s2 + $0x148] sm:$0xff] }
 0x2a4   :  { %v468_v26 = vpop.f32.mrf.mxu1 }
 0x2a5   :  { %v576_v38 = vadd.f32 %v574_v36, %v468_v26  ;;  %v769_v26 = vld [vmem:[%s2371_s2 + $0x190] sm:$0xff] }
 0x2a6   :  { %797 = vmatpush.msra.mxu1 %v769_v26 }
 0x2a8   :  { %798 = vmatpush.msra.mxu1 %v768_v28 }
 0x2aa   :  { %799 = vmatpush.msra.mxu1 %v767_v30 }
 0x2ac   :  { %v471_v32 = vpop.f32.mrf.mxu1 }
 0x2ad   :  { %v577_v1 = vadd.f32 %v575_v44, %v471_v32  ;;  %v766_v32 = vld [vmem:[%s2371_s2 + $0x178] sm:$0xff] }
 0x2ae   :  { %800 = vmatpush.msra.mxu1 %v766_v32 }
 0x2b0   :  { %801 = vmatpush.msra.mxu1 %v765_v34  ;;  %v911_v34 = vld [vmem:[%s2371_s2 + $0x210] sm:$0xff] }
 0x2b2   :  { %802 = vmatpush.msra.mxu1 %v764_v35 }
 0x2b4   :  { %v474_v40 = vpop.f32.mrf.mxu1  ;;  %803 = vmatpush.msra.mxu1 %v763_v37 }
 0x2b5   :  { %v578_v42 = vadd.f32 %v576_v38, %v474_v40  ;;  %v762_v38 = vld [vmem:[%s2371_s2 + $0x158] sm:$0xff]  ;;  %v761_v40 = vld [vmem:[%s2371_s2 + $0x150] sm:$0xff] }
 0x2b6   :  { %804 = vmatpush.msra.mxu1 %v762_v38 }
 0x2b7   :  { %v580_v43 = vmax.f32 %v578_v42, 0.0  ;;  %v2066_v42 = vld [vmem:[%s2371_s2 + $0x278] sm:$0xff] }
 0x2b8   :  { %805 = vmatpush.msra.mxu1 %v761_v40 }
 0x2b9   :  { %1648 = vmatmul.msk.f32.vlgmr.msrb.gmra.mxu3 %vm587_vm11, %v580_v43  ;;  %v700_v43 = vperm.slane %v2066_v42, 0 }
 0x2ba   :  { %985 = vmatpush.msrb.mxu3 %v966_v11  ;;  %806 = vmatpush.msra.mxu1 %v760_v41  ;;  %v838_v11 = vld [vmem:[%s2371_s2 + $0x1d8] sm:$0xff] }
 0x2bc   :  { %v477_v45 = vpop.f32.mrf.mxu1 }
 0x2bd   :  { %v579_v47 = vadd.f32 %v577_v1, %v477_v45 }
 0x2bf   :  { %v581_v48 = vmax.f32 %v579_v47, 0.0 }
 0x2c1   :  { %1649 = vmatmul.msk.f32.gmra.mxu3 %vm587_vm11, %v581_v48 }
 0x33c   :  { %v611_v52 = vpop.f32.mrf.mxu3 }
 0x33d   :  { %v612_v53 = vadd.f32 %v611_v52, %v586_v0 }
 0x33f   :  { %v617_v55 = vmax.f32 %v612_v53, 0.0 }
 0x341   :  { %1650 = vmatmul.msk.f32.vlgmr.msrb.gmra.mxu0 %vm587_vm11, %v617_v55 }
 0x344   :  { %v614_v56 = vpop.f32.mrf.mxu3 }
 0x345   :  { %v615_v57 = vadd.f32 %v614_v56, %v586_v0  ;;  %v1023_v0 = vld [vmem:[%s2371_s2 + $0x230] sm:$0xff] }
 0x346   :  { %1039 = vmatpush.msrb.mxu1 %v1023_v0 }
 0x347   :  { %v618_v58 = vmax.f32 %v615_v57, 0.0 }
 0x349   :  { %1651 = vmatmul.msk.f32.gmra.mxu0 %vm587_vm11, %v618_v58 }
 0x3be   :  { %v647_v59 = vpop.f32.mrf.mxu0 }
 0x3bf   :  { %v648_v8 = vadd.f32 %v647_v59, %v623_v60  ;;  %v843_v59 = vld [vmem:[%s2371_s2 + $0x200] sm:$0xff] }
 0x3c0   :  { %867 = vmatpush.msra.mxu0 %v843_v59 }
 0x3c1   :  { %v689_v15 = vsel %vm200_vm1, %v648_v8, 0.0 }
 0x3c6   :  { %v650_v61 = vpop.f32.mrf.mxu0 }
 0x3c7   :  { %v651_v62 = vadd.f32 %v650_v61, %v623_v60  ;;  %v842_v60 = vld [vmem:[%s2371_s2 + $0x1f8] sm:$0xff] }
 0x3c8   :  { %868 = vmatpush.msra.mxu0 %v842_v60 }
 0x3c9   :  { %668 = vmatpush.msra.mxu2 %v651_v62  ;;  %v690_v12 = vsel %vm200_vm1, %v651_v62, 0.0 }
 0x3ca   :  { %v691_v16 = vadd.f32 %v690_v12, %v689_v15  ;;  %v835_v15 = vld [vmem:[%s2371_s2 + $0x1c0] sm:$0xff] }
 0x3cb   :  { %669 = vmatpush.msra.mxu2 %v648_v8 }
 0x3cc   :  { %1652 = vmatmul.msk.f32.vlgmr.msra.gmra.mxu2 %vm146_vm0, %v1768_v2  ;;  %v692_v17 = vrot.slane %v691_v16, 4 }
 0x3ce   :  { %v693_v20 = vadd.f32 %v692_v17, %v691_v16  ;;  %v834_v16 = vld [vmem:[%s2371_s2 + $0x1b8] sm:$0xff]  ;;  %v833_v17 = vld [vmem:[%s2371_s2 + $0x1b0] sm:$0xff] }
 0x3d0   :  { %v694_v21 = vrot.slane %v693_v20, 2 }
 0x3d2   :  { %v695_v25 = vadd.f32 %v694_v21, %v693_v20  ;;  %v772_v20 = vperm.slane %v2066_v42, 1 }
 0x3d4   :  { %1653 = vmatmul.msk.f32.gmra.mxu2 %vm146_vm0, %v1776_v3  ;;  %v696_v29 = vrot.slane %v695_v25, 1 }
 0x3d6   :  { %v697_v33 = vadd.f32 %v696_v29, %v695_v25 }
 0x3d8   :  { %v698_v36 = vmax.f32 %v697_v33, 0.0  ;;  %v912_v33 = vld [vmem:[%s2371_s2 + $0x218] sm:$0xff] }
 0x3d9   :  { %944 = vmatpush.msrb.mxu2 %v912_v33 }
 0x3db   :  { %945 = vmatpush.msrb.mxu2 %v911_v34 }
 0x3dc   :  { %1654 = vmatmul.msk.f32.gmra.mxu2 %vm146_vm0, %v1783_v4 }
 0x3e4   :  { %1655 = vmatmul.msk.f32.gmra.mxu2 %vm146_vm0, %v1790_v5 }
 0x3ec   :  { %1656 = vmatmul.msk.f32.gmra.mxu2 %vm146_vm0, %v1797_v6 }
 0x3f4   :  { %1657 = vmatmul.msk.f32.gmra.mxu2 %vm146_vm0, %v1804_v7 }
 0x44f   :  { %v671_v27 = vpop.f32.mrf.mxu2 }
 0x450   :  { %1658 = vmatmul.msk.f32.vlgmr.msra.gmra.mxu3 %vm200_vm1, %v671_v27 }
 0x451   :  { %1012 = vmatpush.msra.mxu3 %v990_v14  ;;  %v836_v14 = vld [vmem:[%s2371_s2 + $0x1c8] sm:$0xff] }
 0x457   :  { %v674_v10 = vpop.f32.mrf.mxu2 }
 0x458   :  { %1659 = vmatmul.msk.f32.gmra.mxu3 %vm200_vm1, %v674_v10 }
 0x45f   :  { %v677_v13 = vpop.f32.mrf.mxu2 }
 0x460   :  { %1660 = vmatmul.msk.f32.gmra.mxu3 %vm200_vm1, %v677_v13  ;;  %v837_v13 = vld [vmem:[%s2371_s2 + $0x1d0] sm:$0xff] }
 0x467   :  { %v680_v18 = vpop.f32.mrf.mxu2 }
 0x468   :  { %1661 = vmatmul.msk.f32.gmra.mxu3 %vm200_vm1, %v680_v18  ;;  %v832_v18 = vld [vmem:[%s2371_s2 + $0x1a8] sm:$0xff] }
 0x46f   :  { %v683_v22 = vpop.f32.mrf.mxu2 }
 0x470   :  { %1662 = vmatmul.msk.f32.gmra.mxu3 %vm200_vm1, %v683_v22 }
 0x477   :  { %v686_v31 = vpop.f32.mrf.mxu2 }
 0x478   :  { %1663 = vmatmul.msk.f32.gmra.mxu3 %vm200_vm1, %v686_v31 }
 0x480   :  { %1682 = vmatmul.msk.f32.vlgmr.msrb.gmra.mxu3 %vm200_vm1, %v698_v36 }
 0x488   :  { %1683 = vmatmul.msk.f32.vlgmr.msra.gmra.mxu3 %vm200_vm1, %v648_v8  ;;  %v840_v8 = vld [vmem:[%s2371_s2 + $0x1e8] sm:$0xff] }
 0x490   :  { %1684 = vmatmul.msk.f32.gmra.mxu3 %vm200_vm1, %v651_v62  ;;  %v841_v62 = vld [vmem:[%s2371_s2 + $0x1f0] sm:$0xff] }
 0x491   :  { %869 = vmatpush.msra.mxu0 %v841_v62 }
 0x493   :  { %870 = vmatpush.msra.mxu0 %v840_v8 }
 0x495   :  { %871 = vmatpush.msra.mxu0 %v839_v9 }
 0x497   :  { %872 = vmatpush.msra.mxu0 %v838_v11 }
 0x499   :  { %873 = vmatpush.msra.mxu0 %v837_v13 }
 0x49b   :  { %874 = vmatpush.msra.mxu0 %v836_v14  ;;  %v1063_v14 = vld [vmem:[%s2371_s2 + $0x250] sm:$0xff] }
 0x49d   :  { %875 = vmatpush.msra.mxu0 %v835_v15  ;;  %v1062_v15 = vld [vmem:[%s2371_s2 + $0x248] sm:$0xff] }
 0x49f   :  { %876 = vmatpush.msra.mxu0 %v834_v16  ;;  %v1061_v16 = vld [vmem:[%s2371_s2 + $0x240] sm:$0xff] }
 0x4a1   :  { %877 = vmatpush.msra.mxu0 %v833_v17 }
 0x4a3   :  { %878 = vmatpush.msra.mxu0 %v832_v18  ;;  %v1060_v18 = vld [vmem:[%s2371_s2 + $0x238] sm:$0xff] }
 0x4a5   :  { %1083 = vmatpush.msrb.mxu0 %v1063_v14 }
 0x4a7   :  { %1084 = vmatpush.msrb.mxu0 %v1062_v15 }
 0x4a9   :  { %1085 = vmatpush.msrb.mxu0 %v1061_v16  ;;  %v1248_v16 = vld [vmem:[%s2371_s2 + $0x2e0] sm:$0xff] }
 0x4ab   :  { %1086 = vmatpush.msrb.mxu0 %v1060_v18 }
 0x4d3   :  { %v736_v44 = vpop.f32.mrf.mxu3 }
 0x4d4   :  { %v737_v1 = vadd.f32 %v736_v44, %v700_v43  ;;  %v910_v44 = vld [vmem:[%s2371_s2 + $0x208] sm:$0xff] }
 0x4d5   :  { %946 = vmatpush.msrb.mxu2 %v910_v44 }
 0x4d6   :  { %v754_v45 = vmax.f32 %v737_v1, 0.0  ;;  %v844_v1 = vperm.slane %v2066_v42, 2 }
 0x4d7   :  { %1272 = vmatpush.msra.mxu2 %v1248_v16 }
 0x4d8   :  { %1664 = vmatmul.msk.f32.vlgmr.msra.gmra.mxu1 %vm285_vm2, %v754_v45 }
 0x4db   :  { %v739_v47 = vpop.f32.mrf.mxu3 }
 0x4dc   :  { %v740_v48 = vadd.f32 %v739_v47, %v700_v43 }
 0x4de   :  { %v755_v49 = vmax.f32 %v740_v48, 0.0 }
 0x4e0   :  { %1665 = vmatmul.msk.f32.gmra.mxu1 %vm285_vm2, %v755_v49 }
 0x4e3   :  { %v742_v50 = vpop.f32.mrf.mxu3 }
 0x4e4   :  { %v743_v51 = vadd.f32 %v742_v50, %v700_v43 }
 0x4e6   :  { %v756_v52 = vmax.f32 %v743_v51, 0.0 }
 0x4e8   :  { %1666 = vmatmul.msk.f32.gmra.mxu1 %vm285_vm2, %v756_v52 }
 0x4eb   :  { %v745_v53 = vpop.f32.mrf.mxu3 }
 0x4ec   :  { %v746_v55 = vadd.f32 %v745_v53, %v700_v43 }
 0x4ee   :  { %v757_v56 = vmax.f32 %v746_v55, 0.0 }
 0x4f0   :  { %1667 = vmatmul.msk.f32.gmra.mxu1 %vm285_vm2, %v757_v56 }
 0x4f3   :  { %v748_v57 = vpop.f32.mrf.mxu3 }
 0x4f4   :  { %v749_v58 = vadd.f32 %v748_v57, %v700_v43 }
 0x4f6   :  { %v758_v61 = vmax.f32 %v749_v58, 0.0 }
 0x4f8   :  { %1668 = vmatmul.msk.f32.gmra.mxu1 %vm285_vm2, %v758_v61 }
 0x4fb   :  { %v751_v27 = vpop.f32.mrf.mxu3 }
 0x4fc   :  { %v752_v10 = vadd.f32 %v751_v27, %v700_v43 }
 0x4fe   :  { %v759_v12 = vmax.f32 %v752_v10, 0.0 }
 0x500   :  { %1669 = vmatmul.msk.f32.gmra.mxu1 %vm285_vm2, %v759_v12 }
 0x508   :  { %1685 = vmatmul.msk.f32.vlgmr.msrb.gmra.mxu1 %vm200_vm1, %v1919_v19 }
 0x510   :  { %1686 = vmatmul.msk.f32.gmra.mxu1 %vm200_vm1, %v1936_v39 }
 0x555   :  { %v808_v21 = vpop.f32.mrf.mxu1 }
 0x556   :  { %v809_v22 = vadd.f32 %v808_v21, %v772_v20 }
 0x558   :  { %v826_v23 = vmax.f32 %v809_v22, 0.0  ;;  %v1099_v22 = vld [vmem:[%s2371_s2 + $0x270] sm:$0xff] }
 0x559   :  { %1119 = vmatpush.msrb.mxu3 %v1099_v22 }
 0x55a   :  { %1670 = vmatmul.msk.f32.vlgmr.msra.gmra.mxu0 %vm285_vm2, %v826_v23 }
 0x55d   :  { %v811_v24 = vpop.f32.mrf.mxu1 }
 0x55e   :  { %v812_v25 = vadd.f32 %v811_v24, %v772_v20 }
 0x560   :  { %v827_v26 = vmax.f32 %v812_v25, 0.0 }
 0x562   :  { %1671 = vmatmul.msk.f32.gmra.mxu0 %vm285_vm2, %v827_v26 }
 0x565   :  { %v814_v28 = vpop.f32.mrf.mxu1 }
 0x566   :  { %v815_v29 = vadd.f32 %v814_v28, %v772_v20 }
 0x568   :  { %v828_v30 = vmax.f32 %v815_v29, 0.0 }
 0x56a   :  { %1672 = vmatmul.msk.f32.gmra.mxu0 %vm285_vm2, %v828_v30  ;;  %v1049_v30 = vperm.slane %v2066_v42, 3 }
 0x56d   :  { %v817_v31 = vpop.f32.mrf.mxu1 }
 0x56e   :  { %v818_v32 = vadd.f32 %v817_v31, %v772_v20 }
 0x570   :  { %v829_v35 = vmax.f32 %v818_v32, 0.0 }
 0x572   :  { %1673 = vmatmul.msk.f32.gmra.mxu0 %vm285_vm2, %v829_v35 }
 0x575   :  { %v820_v36 = vpop.f32.mrf.mxu1 }
 0x576   :  { %v821_v37 = vadd.f32 %v820_v36, %v772_v20 }
 0x578   :  { %v830_v38 = vmax.f32 %v821_v37, 0.0 }
 0x57a   :  { %1674 = vmatmul.msk.f32.gmra.mxu0 %vm285_vm2, %v830_v38 }
 0x57d   :  { %v823_v40 = vpop.f32.mrf.mxu1 }
 0x57e   :  { %v824_v41 = vadd.f32 %v823_v40, %v772_v20  ;;  %v987_v20 = vpop.f32.mrf.mxu3 }
 0x57f   :  { %v1020_v26 = vperm.slane %v987_v20, 0  ;;  %v1246_v20 = vld [vmem:[%s2371_s2 + $0x2d0] sm:$0xff] }
 0x580   :  { %v831_v43 = vmax.f32 %v824_v41, 0.0 }
 0x582   :  { %1675 = vmatmul.msk.f32.gmra.mxu0 %vm285_vm2, %v831_v43 }
 0x585   :  { %v1041_v25 = vpop.f32.mrf.mxu1 }
 0x586   :  { %v1014_v23 = vpop.f32.mrf.mxu3 }
 0x587   :  { %v1021_v28 = vadd.f32 %v1020_v26, %v1014_v23  ;;  %v1244_v23 = vld [vmem:[%s2371_s2 + $0x2c0] sm:$0xff] }
 0x589   :  { %v1047_v29 = vadd.f32 %v1041_v25, %v1021_v28  ;;  %v1243_v25 = vld [vmem:[%s2371_s2 + $0x2b8] sm:$0xff]  ;;  %v1242_v28 = vld [vmem:[%s2371_s2 + $0x2b0] sm:$0xff] }
 0x58b   :  { %v1050_v33 = vadd.f32 %v1049_v30, %v1047_v29  ;;  %v1241_v29 = vld [vmem:[%s2371_s2 + $0x2a8] sm:$0xff] }
 0x58d   :  { %v1044_v34 = vpop.f32.mrf.mxu1 }
 0x58e   :  { %v1017_v32 = vpop.f32.mrf.mxu3 }
 0x58f   :  { %v1022_v35 = vadd.f32 %v1020_v26, %v1017_v32  ;;  %v1239_v32 = vld [vmem:[%s2371_s2 + $0x298] sm:$0xff] }
 0x591   :  { %v1048_v37 = vadd.f32 %v1044_v34, %v1022_v35  ;;  %v1237_v34 = vld [vmem:[%s2371_s2 + $0x288] sm:$0xff]  ;;  %v2249_v35 = vld [vmem:[%s2371_s2 + $0x3b8] sm:$0xff] }
 0x593   :  { %v1051_v43 = vadd.f32 %v1049_v30, %v1048_v37 }
 0x5d7   :  { %v880_v45 = vpop.f32.mrf.mxu0 }
 0x5d8   :  { %v881_v47 = vadd.f32 %v880_v45, %v844_v1 }
 0x5da   :  { %v898_v48 = vmax.f32 %v881_v47, 0.0 }
 0x5dc   :  { %v904_v49 = vmul.f32 %v898_v48, %v1946_v46 }
 0x5de   :  { %1676 = vmatmul.msk.f32.vlgmr.msrb.gmra.mxu2 %vm426_vm4, %v904_v49 }
 0x5df   :  { %v883_v50 = vpop.f32.mrf.mxu0 }
 0x5e0   :  { %v884_v51 = vadd.f32 %v883_v50, %v844_v1  ;;  %v1098_v50 = vld [vmem:[%s2371_s2 + $0x268] sm:$0xff] }
 0x5e1   :  { %1120 = vmatpush.msrb.mxu3 %v1098_v50 }
 0x5e2   :  { %v899_v0 = vmax.f32 %v884_v51, 0.0  ;;  %v1097_v51 = vld [vmem:[%s2371_s2 + $0x260] sm:$0xff] }
 0x5e3   :  { %1121 = vmatpush.msrb.mxu3 %v1097_v51 }
 0x5e4   :  { %v905_v52 = vmul.f32 %v899_v0, %v1946_v46  ;;  %v1096_v0 = vld [vmem:[%s2371_s2 + $0x258] sm:$0xff] }
 0x5e5   :  { %1122 = vmatpush.msrb.mxu3 %v1096_v0 }
 0x5e6   :  { %1677 = vmatmul.msk.f32.gmra.mxu2 %vm426_vm4, %v905_v52  ;;  %v1064_v52 = vperm.slane %v2066_v42, 4 }
 0x5e7   :  { %v886_v53 = vpop.f32.mrf.mxu0 }
 0x5e8   :  { %v887_v55 = vadd.f32 %v886_v53, %v844_v1 }
 0x5ea   :  { %v900_v56 = vmax.f32 %v887_v55, 0.0 }
 0x5ec   :  { %v906_v57 = vmul.f32 %v900_v56, %v1952_v54 }
 0x5ee   :  { %1678 = vmatmul.msk.f32.gmra.mxu2 %vm426_vm4, %v906_v57 }
 0x5ef   :  { %v889_v58 = vpop.f32.mrf.mxu0 }
 0x5f0   :  { %v890_v59 = vadd.f32 %v889_v58, %v844_v1 }
 0x5f2   :  { %v901_v60 = vmax.f32 %v890_v59, 0.0 }
 0x5f4   :  { %v907_v61 = vmul.f32 %v901_v60, %v1952_v54 }
 0x5f6   :  { %1679 = vmatmul.msk.f32.gmra.mxu2 %vm426_vm4, %v907_v61  ;;  %v1100_v61 = vperm.slane %v2066_v42, 5  ;;  %v1443_v42 = vld [vmem:[%s2371_s2 + $0x360] sm:$0xff] }
 0x5f7   :  { %v892_v62 = vpop.f32.mrf.mxu0 }
 0x5f8   :  { %v893_v8 = vadd.f32 %v892_v62, %v844_v1 }
 0x5fa   :  { %v902_v9 = vmax.f32 %v893_v8, 0.0 }
 0x5fc   :  { %v908_v27 = vmul.f32 %v902_v9, %v1958_v63 }
 0x5fe   :  { %1680 = vmatmul.msk.f32.gmra.mxu2 %vm426_vm4, %v908_v27  ;;  %v1176_v27 = vld [vmem:[%s2371_s2 + $0x280] sm:$0xff] }
 0x5ff   :  { %v895_v10 = vpop.f32.mrf.mxu0  ;;  %1211 = vmatpush.msra.mxu0 %v1176_v27  ;;  %v1313_v27 = vld [vmem:[%s2371_s2 + $0x308] sm:$0xff] }
 0x600   :  { %v896_v11 = vadd.f32 %v895_v10, %v844_v1 }
 0x602   :  { %v903_v12 = vmax.f32 %v896_v11, 0.0 }
 0x604   :  { %v909_v13 = vmul.f32 %v903_v12, %v1958_v63 }
 0x606   :  { %1681 = vmatmul.msk.f32.gmra.mxu2 %vm426_vm4, %v909_v13 }
 0x661   :  { %v948_v17 = vpop.f32.mrf.mxu2 }
 0x662   :  { %v1052_v36 = vadd.f32 %v1050_v33, %v948_v17  ;;  %v1247_v17 = vld [vmem:[%s2371_s2 + $0x2d8] sm:$0xff]  ;;  %v1238_v33 = vld [vmem:[%s2371_s2 + $0x290] sm:$0xff] }
 0x663   :  { %1273 = vmatpush.msra.mxu2 %v1247_v17  ;;  %v1389_v17 = vld [vmem:[%s2371_s2 + $0x358] sm:$0xff] }
 0x665   :  { %1274 = vmatpush.msra.mxu2 %v1246_v20 }
 0x669   :  { %v951_v21 = vpop.f32.mrf.mxu2 }
 0x66a   :  { %v1053_v1 = vadd.f32 %v1051_v43, %v951_v21  ;;  %v1245_v21 = vld [vmem:[%s2371_s2 + $0x2c8] sm:$0xff] }
 0x66b   :  { %1275 = vmatpush.msra.mxu2 %v1245_v21 }
 0x66d   :  { %1276 = vmatpush.msra.mxu2 %v1244_v23 }
 0x66f   :  { %1277 = vmatpush.msra.mxu2 %v1243_v25 }
 0x671   :  { %v954_v24 = vpop.f32.mrf.mxu2  ;;  %1278 = vmatpush.msra.mxu2 %v1242_v28  ;;  %v1387_v28 = vld [vmem:[%s2371_s2 + $0x348] sm:$0xff] }
 0x672   :  { %v1054_v38 = vadd.f32 %v1052_v36, %v954_v24  ;;  %v1177_v36 = vperm.slane %v2249_v35, 0 }
 0x673   :  { %1279 = vmatpush.msra.mxu2 %v1241_v29  ;;  %v1321_v29 = vperm.slane %v2249_v35, 2 }
 0x679   :  { %v957_v31 = vpop.f32.mrf.mxu2 }
 0x67a   :  { %v1055_v45 = vadd.f32 %v1053_v1, %v957_v31  ;;  %v1240_v31 = vld [vmem:[%s2371_s2 + $0x2a0] sm:$0xff] }
 0x67b   :  { %1280 = vmatpush.msra.mxu2 %v1240_v31 }
 0x67d   :  { %1281 = vmatpush.msra.mxu2 %v1239_v32 }
 0x67f   :  { %1282 = vmatpush.msra.mxu2 %v1238_v33 }
 0x681   :  { %v960_v40 = vpop.f32.mrf.mxu2  ;;  %1283 = vmatpush.msra.mxu2 %v1237_v34 }
 0x682   :  { %v1056_v41 = vadd.f32 %v1054_v38, %v960_v40 }
 0x684   :  { %v1058_v44 = vmax.f32 %v1056_v41, 0.0 }
 0x686   :  { %1687 = vmatmul.msk.f32.vlgmr.msrb.gmra.mxu0 %vm587_vm11, %v1058_v44 }
 0x687   :  { %1462 = vmatpush.msrb.mxu0 %v1443_v42  ;;  %v1310_v42 = vld [vmem:[%s2371_s2 + $0x2f0] sm:$0xff] }
 0x689   :  { %v963_v47 = vpop.f32.mrf.mxu2 }
 0x68a   :  { %v1057_v48 = vadd.f32 %v1055_v45, %v963_v47  ;;  %v1500_v47 = vld [vmem:[%s2371_s2 + $0x370] sm:$0xff] }
 0x68b   :  { %1516 = vmatpush.msrb.mxu2 %v1500_v47 }
 0x68c   :  { %v1059_v49 = vmax.f32 %v1057_v48, 0.0 }
 0x68e   :  { %1688 = vmatmul.msk.f32.gmra.mxu0 %vm587_vm11, %v1059_v49 }
 0x703   :  { %v1088_v53 = vpop.f32.mrf.mxu0 }
 0x704   :  { %v1089_v55 = vadd.f32 %v1088_v53, %v1064_v52  ;;  %v1320_v53 = vld [vmem:[%s2371_s2 + $0x340] sm:$0xff] }
 0x705   :  { %1344 = vmatpush.msra.mxu3 %v1320_v53 }
 0x706   :  { %v1094_v56 = vmax.f32 %v1089_v55, 0.0  ;;  %v1319_v55 = vld [vmem:[%s2371_s2 + $0x338] sm:$0xff] }
 0x707   :  { %1345 = vmatpush.msra.mxu3 %v1319_v55 }
 0x708   :  { %1689 = vmatmul.msk.f32.vlgmr.msrb.gmra.mxu3 %vm587_vm11, %v1094_v56 }
 0x70b   :  { %v1091_v57 = vpop.f32.mrf.mxu0 }
 0x70c   :  { %v1092_v58 = vadd.f32 %v1091_v57, %v1064_v52  ;;  %v1318_v57 = vld [vmem:[%s2371_s2 + $0x330] sm:$0xff] }
 0x70d   :  { %1346 = vmatpush.msra.mxu3 %v1318_v57  ;;  %v1538_v57 = vld [vmem:[%s2371_s2 + $0x380] sm:$0xff] }
 0x70e   :  { %v1095_v59 = vmax.f32 %v1092_v58, 0.0  ;;  %v1317_v58 = vld [vmem:[%s2371_s2 + $0x328] sm:$0xff] }
 0x70f   :  { %1347 = vmatpush.msra.mxu3 %v1317_v58 }
 0x710   :  { %1690 = vmatmul.msk.f32.gmra.mxu3 %vm587_vm11, %v1095_v59  ;;  %v1316_v59 = vld [vmem:[%s2371_s2 + $0x320] sm:$0xff] }
 0x711   :  { %1348 = vmatpush.msra.mxu3 %v1316_v59 }
 0x78b   :  { %v1124_v60 = vpop.f32.mrf.mxu3 }
 0x78c   :  { %v1125_v9 = vadd.f32 %v1124_v60, %v1100_v61 }
 0x793   :  { %v1127_v62 = vpop.f32.mrf.mxu3 }
 0x794   :  { %v1128_v8 = vadd.f32 %v1127_v62, %v1100_v61  ;;  %v1315_v62 = vld [vmem:[%s2371_s2 + $0x318] sm:$0xff] }
 0x795   :  { %1349 = vmatpush.msra.mxu3 %v1315_v62 }
 0x796   :  { %1145 = vmatpush.msra.mxu1 %v1128_v8 }
 0x798   :  { %1146 = vmatpush.msra.mxu1 %v1125_v9 }
 0x799   :  { %1691 = vmatmul.msk.f32.vlgmr.msra.gmra.mxu1 %vm146_vm0, %v1768_v2 }
 0x79a   :  { %1421 = vmatpush.msrb.mxu1 %v1389_v17 }
 0x7a1   :  { %1692 = vmatmul.msk.f32.gmra.mxu1 %vm146_vm0, %v1776_v3 }
 0x7a9   :  { %1693 = vmatmul.msk.f32.gmra.mxu1 %vm146_vm0, %v1783_v4  ;;  %v1167_v4 = vsel %vm200_vm1, %v1128_v8, 0.0 }
 0x7b1   :  { %1694 = vmatmul.msk.f32.gmra.mxu1 %vm146_vm0, %v1790_v5 }
 0x7b9   :  { %1695 = vmatmul.msk.f32.gmra.mxu1 %vm146_vm0, %v1797_v6  ;;  %v1467_v6 = vld [vmem:[%s2371_s2 + $0x368] sm:$0xff] }
 0x7c1   :  { %1696 = vmatmul.msk.f32.gmra.mxu1 %vm146_vm0, %v1804_v7  ;;  %v1166_v7 = vsel %vm200_vm1, %v1125_v9, 0.0 }
 0x7c2   :  { %v1168_v10 = vadd.f32 %v1167_v4, %v1166_v7  ;;  %v1309_v4 = vld [vmem:[%s2371_s2 + $0x2e8] sm:$0xff] }
 0x7c4   :  { %v1169_v11 = vrot.slane %v1168_v10, 4 }
 0x7c6   :  { %v1170_v13 = vadd.f32 %v1169_v11, %v1168_v10 }
 0x7c8   :  { %v1171_v14 = vrot.slane %v1170_v13, 2 }
 0x7ca   :  { %v1172_v18 = vadd.f32 %v1171_v14, %v1170_v13 }
 0x7cc   :  { %v1173_v22 = vrot.slane %v1172_v18, 1 }
 0x7ce   :  { %v1174_v26 = vadd.f32 %v1173_v22, %v1172_v18  ;;  %v1388_v18 = vld [vmem:[%s2371_s2 + $0x350] sm:$0xff] }
 0x7cf   :  { %1422 = vmatpush.msrb.mxu1 %v1388_v18 }
 0x7d0   :  { %v1175_v30 = vmax.f32 %v1174_v26, 0.0 }
 0x7d1   :  { %1423 = vmatpush.msrb.mxu1 %v1387_v28 }
 0x816   :  { %v1148_v2 = vpop.f32.mrf.mxu1 }
 0x817   :  { %1697 = vmatmul.msk.f32.vlgmr.msra.gmra.mxu0 %vm200_vm1, %v1148_v2  ;;  %v1312_v2 = vld [vmem:[%s2371_s2 + $0x300] sm:$0xff] }
 0x818   :  { %1489 = vmatpush.msra.mxu0 %v1467_v6 }
 0x81e   :  { %v1151_v3 = vpop.f32.mrf.mxu1 }
 0x81f   :  { %1698 = vmatmul.msk.f32.gmra.mxu0 %vm200_vm1, %v1151_v3  ;;  %v1311_v3 = vld [vmem:[%s2371_s2 + $0x2f8] sm:$0xff] }
 0x826   :  { %v1154_v5 = vpop.f32.mrf.mxu1 }
 0x827   :  { %1699 = vmatmul.msk.f32.gmra.mxu0 %vm200_vm1, %v1154_v5 }
 0x82e   :  { %v1157_v12 = vpop.f32.mrf.mxu1 }
 0x82f   :  { %1700 = vmatmul.msk.f32.gmra.mxu0 %vm200_vm1, %v1157_v12 }
 0x836   :  { %v1160_v15 = vpop.f32.mrf.mxu1 }
 0x837   :  { %1701 = vmatmul.msk.f32.gmra.mxu0 %vm200_vm1, %v1160_v15 }
 0x83e   :  { %v1163_v24 = vpop.f32.mrf.mxu1 }
 0x83f   :  { %1702 = vmatmul.msk.f32.gmra.mxu0 %vm200_vm1, %v1163_v24 }
 0x847   :  { %1721 = vmatmul.msk.f32.vlgmr.msrb.gmra.mxu0 %vm200_vm1, %v1175_v30 }
 0x84f   :  { %1722 = vmatmul.msk.f32.vlgmr.msra.gmra.mxu0 %vm200_vm1, %v1125_v9  ;;  %v1314_v9 = vld [vmem:[%s2371_s2 + $0x310] sm:$0xff] }
 0x850   :  { %1350 = vmatpush.msra.mxu3 %v1314_v9 }
 0x852   :  { %1351 = vmatpush.msra.mxu3 %v1313_v27 }
 0x854   :  { %1352 = vmatpush.msra.mxu3 %v1312_v2 }
 0x856   :  { %1353 = vmatpush.msra.mxu3 %v1311_v3 }
 0x857   :  { %1723 = vmatmul.msk.f32.gmra.mxu0 %vm200_vm1, %v1128_v8 }
 0x858   :  { %1354 = vmatpush.msra.mxu3 %v1310_v42  ;;  %v1526_v42 = vperm.slane %v2249_v35, 3 }
 0x85a   :  { %1355 = vmatpush.msra.mxu3 %v1309_v4 }
 0x894   :  { %v1213_v37 = vpop.f32.mrf.mxu0 }
 0x895   :  { %v1214_v38 = vadd.f32 %v1213_v37, %v1177_v36 }
 0x897   :  { %v1231_v40 = vmax.f32 %v1214_v38, 0.0 }
 0x899   :  { %1703 = vmatmul.msk.f32.vlgmr.msra.gmra.mxu2 %vm285_vm2, %v1231_v40 }
 0x89c   :  { %v1216_v41 = vpop.f32.mrf.mxu0 }
 0x89d   :  { %v1217_v43 = vadd.f32 %v1216_v41, %v1177_v36 }
 0x89f   :  { %v1232_v44 = vmax.f32 %v1217_v43, 0.0 }
 0x8a1   :  { %1704 = vmatmul.msk.f32.gmra.mxu2 %vm285_vm2, %v1232_v44 }
 0x8a4   :  { %v1219_v1 = vpop.f32.mrf.mxu0 }
 0x8a5   :  { %v1220_v45 = vadd.f32 %v1219_v1, %v1177_v36 }
 0x8a7   :  { %v1233_v48 = vmax.f32 %v1220_v45, 0.0 }
 0x8a9   :  { %1705 = vmatmul.msk.f32.gmra.mxu2 %vm285_vm2, %v1233_v48 }
 0x8ac   :  { %v1222_v49 = vpop.f32.mrf.mxu0 }
 0x8ad   :  { %v1223_v50 = vadd.f32 %v1222_v49, %v1177_v36 }
 0x8af   :  { %v1234_v51 = vmax.f32 %v1223_v50, 0.0 }
 0x8b1   :  { %1706 = vmatmul.msk.f32.gmra.mxu2 %vm285_vm2, %v1234_v51 }
 0x8b4   :  { %v1225_v0 = vpop.f32.mrf.mxu0 }
 0x8b5   :  { %v1226_v52 = vadd.f32 %v1225_v0, %v1177_v36 }
 0x8b7   :  { %v1235_v56 = vmax.f32 %v1226_v52, 0.0 }
 0x8b9   :  { %1707 = vmatmul.msk.f32.gmra.mxu2 %vm285_vm2, %v1235_v56  ;;  %v1539_v56 = vld [vmem:[%s2371_s2 + $0x388] sm:$0xff] }
 0x8bc   :  { %v1228_v60 = vpop.f32.mrf.mxu0 }
 0x8bd   :  { %v1229_v61 = vadd.f32 %v1228_v60, %v1177_v36 }
 0x8bf   :  { %v1236_v8 = vmax.f32 %v1229_v61, 0.0  ;;  %v1576_v61 = vld [vmem:[%s2371_s2 + $0x3b0] sm:$0xff] }
 0x8c0   :  { %1596 = vmatpush.msrb.mxu0 %v1576_v61 }
 0x8c1   :  { %1708 = vmatmul.msk.f32.gmra.mxu2 %vm285_vm2, %v1236_v8 }
 0x8c4   :  { %v1464_v59 = vpop.f32.mrf.mxu0 }
 0x8c5   :  { %v1497_v27 = vperm.slane %v1464_v59, 0 }
 0x8c9   :  { %1724 = vmatmul.msk.f32.vlgmr.msrb.gmra.mxu2 %vm200_vm1, %v1919_v19  ;;  %v1249_v19 = vperm.slane %v2249_v35, 1 }
 0x8cc   :  { %v1491_v62 = vpop.f32.mrf.mxu0 }
 0x8cd   :  { %v1498_v2 = vadd.f32 %v1497_v27, %v1491_v62 }
 0x8d1   :  { %1725 = vmatmul.msk.f32.gmra.mxu2 %vm200_vm1, %v1936_v39 }
 0x91c   :  { %v1285_v5 = vpop.f32.mrf.mxu2 }
 0x91d   :  { %v1286_v6 = vadd.f32 %v1285_v5, %v1249_v19 }
 0x91f   :  { %v1303_v39 = vmax.f32 %v1286_v6, 0.0 }
 0x921   :  { %1709 = vmatmul.msk.f32.vlgmr.msra.gmra.mxu3 %vm285_vm2, %v1303_v39 }
 0x924   :  { %v1288_v7 = vpop.f32.mrf.mxu2 }
 0x925   :  { %v1289_v10 = vadd.f32 %v1288_v7, %v1249_v19 }
 0x927   :  { %v1304_v11 = vmax.f32 %v1289_v10, 0.0 }
 0x929   :  { %1710 = vmatmul.msk.f32.gmra.mxu3 %vm285_vm2, %v1304_v11 }
 0x92c   :  { %v1291_v12 = vpop.f32.mrf.mxu2 }
 0x92d   :  { %v1292_v13 = vadd.f32 %v1291_v12, %v1249_v19 }
 0x92f   :  { %v1305_v14 = vmax.f32 %v1292_v13, 0.0 }
 0x931   :  { %1711 = vmatmul.msk.f32.gmra.mxu3 %vm285_vm2, %v1305_v14 }
 0x934   :  { %v1294_v15 = vpop.f32.mrf.mxu2 }
 0x935   :  { %v1295_v16 = vadd.f32 %v1294_v15, %v1249_v19 }
 0x937   :  { %v1306_v20 = vmax.f32 %v1295_v16, 0.0 }
 0x939   :  { %1712 = vmatmul.msk.f32.gmra.mxu3 %vm285_vm2, %v1306_v20 }
 0x93c   :  { %v1297_v21 = vpop.f32.mrf.mxu2 }
 0x93d   :  { %v1298_v22 = vadd.f32 %v1297_v21, %v1249_v19 }
 0x93f   :  { %v1307_v23 = vmax.f32 %v1298_v22, 0.0  ;;  %v1575_v22 = vld [vmem:[%s2371_s2 + $0x3a8] sm:$0xff] }
 0x940   :  { %1597 = vmatpush.msrb.mxu0 %v1575_v22 }
 0x941   :  { %1713 = vmatmul.msk.f32.gmra.mxu3 %vm285_vm2, %v1307_v23  ;;  %v1574_v23 = vld [vmem:[%s2371_s2 + $0x3a0] sm:$0xff] }
 0x942   :  { %1598 = vmatpush.msrb.mxu0 %v1574_v23 }
 0x944   :  { %v1300_v24 = vpop.f32.mrf.mxu2 }
 0x945   :  { %v1301_v25 = vadd.f32 %v1300_v24, %v1249_v19  ;;  %v1494_v19 = vpop.f32.mrf.mxu0  ;;  %v1573_v24 = vld [vmem:[%s2371_s2 + $0x398] sm:$0xff] }
 0x946   :  { %v1499_v39 = vadd.f32 %v1497_v27, %v1494_v19  ;;  %1599 = vmatpush.msrb.mxu0 %v1573_v24 }
 0x947   :  { %v1308_v26 = vmax.f32 %v1301_v25, 0.0  ;;  %v1541_v25 = vperm.slane %v2249_v35, 4 }
 0x949   :  { %1714 = vmatmul.msk.f32.gmra.mxu3 %vm285_vm2, %v1308_v26 }
 0x94c   :  { %v1518_v9 = vpop.f32.mrf.mxu2 }
 0x94d   :  { %v1524_v3 = vadd.f32 %v1518_v9, %v1498_v2 }
 0x94f   :  { %v1527_v5 = vadd.f32 %v1526_v42, %v1524_v3 }
 0x954   :  { %v1521_v6 = vpop.f32.mrf.mxu2 }
 0x955   :  { %v1525_v10 = vadd.f32 %v1521_v6, %v1499_v39 }
 0x957   :  { %v1528_v14 = vadd.f32 %v1526_v42, %v1525_v10 }
 0x9a4   :  { %v1357_v30 = vpop.f32.mrf.mxu3 }
 0x9a5   :  { %v1358_v31 = vadd.f32 %v1357_v30, %v1321_v29 }
 0x9a7   :  { %v1375_v32 = vmax.f32 %v1358_v31, 0.0 }
 0x9a9   :  { %v1381_v33 = vmul.f32 %v1375_v32, %v1946_v46 }
 0x9ab   :  { %1715 = vmatmul.msk.f32.vlgmr.msrb.gmra.mxu1 %vm426_vm4, %v1381_v33  ;;  %v1577_v33 = vperm.slane %v2249_v35, 5 }
 0x9ac   :  { %v1360_v34 = vpop.f32.mrf.mxu3 }
 0x9ad   :  { %v1361_v36 = vadd.f32 %v1360_v34, %v1321_v29 }
 0x9af   :  { %v1376_v37 = vmax.f32 %v1361_v36, 0.0 }
 0x9b1   :  { %v1382_v38 = vmul.f32 %v1376_v37, %v1946_v46 }
 0x9b3   :  { %1716 = vmatmul.msk.f32.gmra.mxu1 %vm426_vm4, %v1382_v38 }
 0x9b4   :  { %v1363_v40 = vpop.f32.mrf.mxu3 }
 0x9b5   :  { %v1364_v41 = vadd.f32 %v1363_v40, %v1321_v29 }
 0x9b7   :  { %v1377_v43 = vmax.f32 %v1364_v41, 0.0 }
 0x9b9   :  { %v1383_v44 = vmul.f32 %v1377_v43, %v1952_v54 }
 0x9bb   :  { %1717 = vmatmul.msk.f32.gmra.mxu1 %vm426_vm4, %v1383_v44 }
 0x9bc   :  { %v1366_v1 = vpop.f32.mrf.mxu3 }
 0x9bd   :  { %v1367_v45 = vadd.f32 %v1366_v1, %v1321_v29 }
 0x9bf   :  { %v1378_v47 = vmax.f32 %v1367_v45, 0.0 }
 0x9c1   :  { %v1384_v48 = vmul.f32 %v1378_v47, %v1952_v54  ;;  %v1540_v54 = vld [vmem:[%s2371_s2 + $0x390] sm:$0xff] }
 0x9c2   :  { %1560 = vmatpush.msrb.mxu3 %v1540_v54 }
 0x9c3   :  { %1718 = vmatmul.msk.f32.gmra.mxu1 %vm426_vm4, %v1384_v48 }
 0x9c4   :  { %v1369_v49 = vpop.f32.mrf.mxu3  ;;  %1561 = vmatpush.msrb.mxu3 %v1539_v56 }
 0x9c5   :  { %v1370_v50 = vadd.f32 %v1369_v49, %v1321_v29 }
 0x9c6   :  { %1562 = vmatpush.msrb.mxu3 %v1538_v57 }
 0x9c7   :  { %v1379_v51 = vmax.f32 %v1370_v50, 0.0 }
 0x9c9   :  { %v1385_v46 = vmul.f32 %v1379_v51, %v1958_v63 }
 0x9cb   :  { %1719 = vmatmul.msk.f32.gmra.mxu1 %vm426_vm4, %v1385_v46 }
 0x9cc   :  { %v1372_v0 = vpop.f32.mrf.mxu3 }
 0x9cd   :  { %v1373_v52 = vadd.f32 %v1372_v0, %v1321_v29 }
 0x9cf   :  { %v1380_v53 = vmax.f32 %v1373_v52, 0.0 }
 0x9d1   :  { %v1386_v55 = vmul.f32 %v1380_v53, %v1958_v63  ;;  %v1537_v63 = vld [vmem:[%s2371_s2 + $0x378] sm:$0xff] }
 0x9d2   :  { %1563 = vmatpush.msrb.mxu3 %v1537_v63 }
 0x9d3   :  { %1720 = vmatmul.msk.f32.gmra.mxu1 %vm426_vm4, %v1386_v55 }
 0xa28   :  { %v1425_v58 = vpop.f32.mrf.mxu1 }
 0xa29   :  { %v1529_v7 = vadd.f32 %v1527_v5, %v1425_v58 }
 0xa30   :  { %v1428_v60 = vpop.f32.mrf.mxu1 }
 0xa31   :  { %v1530_v16 = vadd.f32 %v1528_v14, %v1428_v60 }
 0xa38   :  { %v1431_v8 = vpop.f32.mrf.mxu1 }
 0xa39   :  { %v1531_v11 = vadd.f32 %v1529_v7, %v1431_v8 }
 0xa40   :  { %v1434_v4 = vpop.f32.mrf.mxu1 }
 0xa41   :  { %v1532_v17 = vadd.f32 %v1530_v16, %v1434_v4 }
 0xa48   :  { %v1437_v12 = vpop.f32.mrf.mxu1 }
 0xa49   :  { %v1533_v13 = vadd.f32 %v1531_v11, %v1437_v12 }
 0xa4b   :  { %v1535_v15 = vmax.f32 %v1533_v13, 0.0 }
 0xa4d   :  { %1726 = vmatmul.msk.f32.vlgmr.msrb.gmra.mxu3 %vm587_vm11, %v1535_v15 }
 0xa50   :  { %v1440_v18 = vpop.f32.mrf.mxu1 }
 0xa51   :  { %v1534_v20 = vadd.f32 %v1532_v17, %v1440_v18 }
 0xa53   :  { %v1536_v21 = vmax.f32 %v1534_v20, 0.0 }
 0xa55   :  { %1727 = vmatmul.msk.f32.gmra.mxu3 %vm587_vm11, %v1536_v21 }
 0xad0   :  { %v1565_v26 = vpop.f32.mrf.mxu3 }
 0xad1   :  { %v1566_v28 = vadd.f32 %v1565_v26, %v1541_v25 }
 0xad3   :  { %v1571_v29 = vmax.f32 %v1566_v28, 0.0 }
 0xad5   :  { %1728 = vmatmul.msk.f32.vlgmr.msrb.gmra.mxu0 %vm587_vm11, %v1571_v29 }
 0xad8   :  { %v1568_v30 = vpop.f32.mrf.mxu3 }
 0xad9   :  { %v1569_v31 = vadd.f32 %v1568_v30, %v1541_v25 }
 0xadb   :  { %v1572_v32 = vmax.f32 %v1569_v31, 0.0 }
 0xadd   :  { %1729 = vmatmul.msk.f32.gmra.mxu0 %vm587_vm11, %v1572_v32 }
 0xb52   :  { %v1601_v34 = vpop.f32.mrf.mxu0 }
 0xb53   :  { %v1602_v36 = vadd.f32 %v1601_v34, %v1577_v33 }
 0xb55   :  { %1607 = vst.msk [vmem:[%s2372_s3] sm:$0xff] %vm200_vm1, %v1602_v36 }
 0xb5a   :  { %v1604_v37 = vpop.f32.mrf.mxu0 }
 0xb5b   :  { %v1605_v38 = vadd.f32 %v1604_v37, %v1577_v33 }
 0xb5d   :  { %1608 = vst.msk [vmem:[%s2372_s3 + $0x8] sm:$0xff] %vm200_vm1, %v1605_v38 }

</bundles_post_ra>
